<compile_context>
chip_gen: v7x
topology: tpu7x:2x2x1
jax: 0.10.0
libtpu: 0.0.40
codegen_flags: <defaults>
</compile_context>

<pallas_src>
import functools

import jax
import jax.numpy as jnp
from jax.experimental import pallas as pl
from jax.experimental.pallas import tpu as pltpu


# ----------------------------------------------------------------------------
# In-kernel helpers
# ----------------------------------------------------------------------------
def _conv_tile(xt, w_ref, rate, *, TR, W, Cin, R):
    """Dilated 3x3 'same' conv for one row tile: 9 accumulated K=Cin MXU matmuls.

    xt    : (TR + 2R, W + 2R, Cin) halo'ed input rows (already loaded, compute dtype)
    w_ref : (9, Cin, Cp) shared conv weight, tap-major (index = kh*3 + kw)
    Returns (TR*W, Cp) float32.
    """
    acc = None
    for kh in range(3):
        ho = R + (kh - 1) * rate
        for kw in range(3):
            wo = R + (kw - 1) * rate
            tap = xt[ho:ho + TR, wo:wo + W, :].reshape(TR * W, Cin)
            part = jnp.dot(tap, w_ref[3 * kh + kw, :, :],
                           preferred_element_type=jnp.float32)
            acc = part if acc is None else acc + part
    return acc


def _gn_scale_shift(x_f32, gamma_row, beta_row, *, G, gs, cnt, eps):
    """Per-channel (1, C) scale/shift implementing GroupNorm over an (M, C) slab."""
    s = jnp.sum(x_f32, axis=0, keepdims=True)                 # (1, C)
    ss = jnp.sum(x_f32 * x_f32, axis=0, keepdims=True)        # (1, C)
    gsum = jnp.sum(s.reshape(G, gs), axis=1, keepdims=True)   # (G, 1)
    gssq = jnp.sum(ss.reshape(G, gs), axis=1, keepdims=True)  # (G, 1)
    mean = gsum / cnt
    # TODO(synk): E[x^2]-mean^2 is cancellation-prone at very large HW; switch to a
    # shifted / Welford accumulation if production stats drift.
    var = jnp.maximum(gssq / cnt - mean * mean, 0.0)
    inv = jax.lax.rsqrt(var + eps)
    inv_c = jnp.broadcast_to(inv, (G, gs)).reshape(1, G * gs)
    mean_c = jnp.broadcast_to(mean, (G, gs)).reshape(1, G * gs)
    scale = gamma_row * inv_c
    shift = beta_row - mean_c * scale
    return scale, shift


# ----------------------------------------------------------------------------
# Pass 1: per-branch / per-channel sum & sum-of-squares (GroupNorm statistics)
# ----------------------------------------------------------------------------
def _stats_kernel(x_ref, w_ref, stats_ref, *, rates, TR, W, Cin, R):
    t = pl.program_id(1)

    @pl.when(t == 0)
    def _init():
        stats_ref[...] = jnp.zeros_like(stats_ref)

    xt = x_ref[pl.ds(t * TR, TR + 2 * R), :, :]               # halo'ed row tile
    srows, qrows = [], []
    for rate in rates:
        y = _conv_tile(xt, w_ref, rate, TR=TR, W=W, Cin=Cin, R=R)   # (TR*W, Cp) f32
        srows.append(jnp.sum(y, axis=0, keepdims=True))
        qrows.append(jnp.sum(y * y, axis=0, keepdims=True))
    stats_ref[...] += jnp.concatenate(srows + qrows, axis=0)        # (6, Cp)


# ----------------------------------------------------------------------------
# Pass 2: conv + branch GN/ReLU + folded 1x1 projection + projection GN/ReLU
# ----------------------------------------------------------------------------
def _main_kernel(x_ref, w_ref, pw_ref, bnorm_ref, pgn_ref, out_ref, proj_ref, *,
                 rates, TR, W, Cin, Cp, R, G, gs, HW, eps, compute_dtype):
    t = pl.program_id(1)
    TRW = TR * W

    xt = x_ref[pl.ds(t * TR, TR + 2 * R), :, :]               # halo'ed row tile
    proj = None
    for b, rate in enumerate(rates):
        # Only ONE branch's f32 activation slab is live at a time.
        y = _conv_tile(xt, w_ref, rate, TR=TR, W=W, Cin=Cin, R=R)   # (TRW, Cp) f32
        scale = bnorm_ref[b:b + 1, :]                         # precomputed (pass 1)
        shift = bnorm_ref[3 + b:4 + b, :]
        rb = jnp.maximum(y * scale + shift, 0.0).astype(compute_dtype)
        # Channel concat folded into 3 accumulated partial 1x1-projection matmuls.
        part = jnp.dot(rb, pw_ref[b * Cp:(b + 1) * Cp, :],
                       preferred_element_type=jnp.float32)
        proj = part if proj is None else proj + part          # (TRW, Cp) f32

    row0 = t * TRW
    if TRW % 8 == 0:
        row0 = pl.multiple_of(row0, 8)
    proj_ref[pl.ds(row0, TRW), :] = proj      # stage un-normalized projection

    @pl.when(t == pl.num_programs(1) - 1)
    def _finalize():
        p = proj_ref[...]                                     # (HW, Cp) f32
        scale, shift = _gn_scale_shift(p, pgn_ref[0:1, :], pgn_ref[1:2, :],
                                       G=G, gs=gs, cnt=float(HW * gs), eps=eps)
        out_ref[...] = jnp.maximum(p * scale + shift, 0.0).astype(out_ref.dtype)


# ----------------------------------------------------------------------------
# Wrapper
# ----------------------------------------------------------------------------
def aspp_share_forward(x_nhwc, w_hwio, proj_w, gammas, betas, rates,
                       num_groups=32, eps=1e-5, compute_dtype=jnp.bfloat16,
                       row_tile=8):
    """ASPP_share forward.  x_nhwc: (N, H, W, Cin); returns (N, H, W, Cout)."""
    N, H, W, Cin = x_nhwc.shape
    Cout = w_hwio.shape[-1]
    assert Cout % num_groups == 0
    assert len(rates) == 3
    rates = tuple(int(r) for r in rates)
    R = max(rates)
    if H % row_tile != 0:
        # TODO(synk): ragged last row tile; fall back to a single tile per sample.
        row_tile = H
    TR = row_tile
    T = H // TR
    HW = H * W
    gs = Cout // num_groups

    # Lane-dense channel padding.  Padded channels carry zero weights/gamma/beta,
    # form their own GN groups and stay exactly 0; sliced off after the call.
    Cp = -(-Cout // 128) * 128
    if Cp % gs != 0:
        Cp = Cout
    pad_c = Cp - Cout
    G = Cp // gs

    w9 = jnp.pad(w_hwio.reshape(9, Cin, Cout),
                 ((0, 0), (0, 0), (0, pad_c))).astype(compute_dtype)        # (9,Cin,Cp)
    pw = jnp.pad(proj_w.reshape(3, Cout, Cout),
                 ((0, 0), (0, pad_c), (0, pad_c))).reshape(3 * Cp, Cp)
    pw = pw.astype(compute_dtype)                                           # (3*Cp,Cp)
    gam = jnp.pad(gammas, ((0, 0), (0, pad_c))).astype(jnp.float32)         # (4, Cp)
    bet = jnp.pad(betas, ((0, 0), (0, pad_c))).astype(jnp.float32)

    # Raw NHWC input, spatially padded by the max dilation only (~1.1x raw bytes;
    # no 27x HBM im2col).  The padded sample stays VMEM-resident across row tiles.
    xp = jnp.pad(x_nhwc, ((0, 0), (R, R), (R, R), (0, 0))).astype(compute_dtype)
    Hp, Wp = H + 2 * R, W + 2 * R

    cparams = pltpu.CompilerParams(
        dimension_semantics=("parallel", "arbitrary"),   # batch || , row tiles seq
        vmem_limit_bytes=48 * 1024 * 1024)               # <= v7x 64 MiB physical

    conv_flops = 2 * HW * 9 * Cin * Cp * 3
    proj_flops = 2 * HW * 3 * Cp * Cp
    in_bytes = int(xp.size) * xp.dtype.itemsize + int(w9.size) * w9.dtype.itemsize

    # ---- Pass 1: accumulate per-branch per-channel sum / sum-of-squares ------
    stats = pl.pallas_call(
        functools.partial(_stats_kernel, rates=rates, TR=TR, W=W, Cin=Cin, R=R),
        out_shape=jax.ShapeDtypeStruct((N, 6, Cp), jnp.float32),
        grid=(N, T),
        in_specs=[
            pl.BlockSpec((None, Hp, Wp, Cin), lambda n, t: (n, 0, 0, 0)),
            pl.BlockSpec((9, Cin, Cp), lambda n, t: (0, 0, 0)),
        ],
        out_specs=pl.BlockSpec((None, 6, Cp), lambda n, t: (n, 0, 0)),
        compiler_params=cparams,
        cost_estimate=pl.CostEstimate(flops=N * conv_flops, transcendentals=0,
                                      bytes_accessed=in_bytes + N * 6 * Cp * 4),
    )(xp, w9)

    # ---- Collapse stats to per-(sample, branch, channel) GN scale / shift ----
    cnt = float(HW * gs)
    bsum = stats[:, 0:3, :].reshape(N, 3, G, gs)
    bssq = stats[:, 3:6, :].reshape(N, 3, G, gs)
    gmean = jnp.sum(bsum, axis=-1, keepdims=True) / cnt
    gvar = jnp.maximum(jnp.sum(bssq, axis=-1, keepdims=True) / cnt - gmean * gmean,
                       0.0)
    ginv = jax.lax.rsqrt(gvar + eps)
    mean_c = jnp.broadcast_to(gmean, (N, 3, G, gs)).reshape(N, 3, Cp)
    inv_c = jnp.broadcast_to(ginv, (N, 3, G, gs)).reshape(N, 3, Cp)
    scale = gam[None, 0:3, :] * inv_c
    shift = bet[None, 0:3, :] - mean_c * scale
    bnorm = jnp.concatenate([scale, shift], axis=1)            # (N, 6, Cp) f32
    pgn = jnp.stack([gam[3], bet[3]], axis=0)                  # (2, Cp)   f32

    # ---- Pass 2: fused conv + branch GN/ReLU + projection + proj GN/ReLU -----
    out_flat = pl.pallas_call(
        functools.partial(_main_kernel, rates=rates, TR=TR, W=W, Cin=Cin, Cp=Cp,
                          R=R, G=G, gs=gs, HW=HW, eps=eps,
                          compute_dtype=compute_dtype),
        out_shape=jax.ShapeDtypeStruct((N, HW, Cp), x_nhwc.dtype),
        grid=(N, T),
        in_specs=[
            pl.BlockSpec((None, Hp, Wp, Cin), lambda n, t: (n, 0, 0, 0)),
            pl.BlockSpec((9, Cin, Cp), lambda n, t: (0, 0, 0)),
            pl.BlockSpec((3 * Cp, Cp), lambda n, t: (0, 0)),
            pl.BlockSpec((None, 6, Cp), lambda n, t: (n, 0, 0)),
            pl.BlockSpec((2, Cp), lambda n, t: (0, 0)),
        ],
        out_specs=pl.BlockSpec((None, HW, Cp), lambda n, t: (n, 0, 0)),
        scratch_shapes=[pltpu.VMEM((HW, Cp), jnp.float32)],
        compiler_params=cparams,
        cost_estimate=pl.CostEstimate(
            flops=N * (conv_flops + proj_flops), transcendentals=N * G,
            bytes_accessed=in_bytes + int(pw.size) * pw.dtype.itemsize
            + N * HW * Cp * x_nhwc.dtype.itemsize),
    )(xp, w9, pw, bnorm, pgn)

    out = out_flat.reshape(N, H, W, Cp)                        # free, contiguous
    return out[..., :Cout] if pad_c else out


# ---------------------------------------------------------------------------
# Pure-JAX reference (lax conv) for correctness checking.
# ---------------------------------------------------------------------------
def _ref_group_norm(x, gamma, beta, num_groups, eps):
    n, h, w, c = x.shape
    gs = c // num_groups
    g = x.reshape(n, h, w, num_groups, gs)
    mean = jnp.mean(g, axis=(1, 2, 4), keepdims=True)
    var = jnp.mean((g - mean) ** 2, axis=(1, 2, 4), keepdims=True)
    gn = ((g - mean) * jax.lax.rsqrt(var + eps)).reshape(n, h, w, c)
    return gn * gamma + beta


def ref_forward(x_nhwc, w_hwio, proj_w, gammas, betas, rates,
                num_groups=32, eps=1e-5):
    outs = []
    for bi, d in enumerate(rates):
        y = jax.lax.conv_general_dilated(
            x_nhwc, w_hwio, window_strides=(1, 1),
            padding=[(d, d), (d, d)], rhs_dilation=(d, d),
            dimension_numbers=('NHWC', 'HWIO', 'NHWC'))
        y = _ref_group_norm(y, gammas[bi], betas[bi], num_groups, eps)
        outs.append(jnp.maximum(y, 0.0))
    cat = jnp.concatenate(outs, axis=-1)
    p = jnp.einsum('nhwc,cd->nhwd', cat, proj_w)
    p = _ref_group_norm(p, gammas[3], betas[3], num_groups, eps)
    return jnp.maximum(p, 0.0)


if __name__ == "__main__":
    # Small shapes consistent with the module: GroupNorm(32, C) requires C % 32 == 0.
    N, Cin, H, W = 2, 4, 16, 16
    Cout = 64
    rates = (1, 2, 3)
    num_groups = 32

    key = jax.random.PRNGKey(0)
    k_x, k_w, k_pw, k_g, k_b = jax.random.split(key, 5)

    x = jax.random.normal(k_x, (N, Cin, H, W), jnp.float32)          # NCHW (PyTorch)
    x_nhwc = jnp.transpose(x, (0, 2, 3, 1))                          # -> NHWC

    # shared_weights = torch.randn(Cout, Cin, 3, 3)  (OIHW)  -> HWIO
    shared_w = jax.random.normal(k_w, (Cout, Cin, 3, 3), jnp.float32)
    w_hwio = jnp.transpose(shared_w, (2, 3, 1, 0))                   # (3,3,Cin,Cout)

    # project 1x1 conv weight (Cout, 3*Cout, 1, 1) -> (3*Cout, Cout)
    proj_w_torch = jax.random.normal(k_pw, (Cout, 3 * Cout, 1, 1), jnp.float32) * 0.05
    proj_w = jnp.transpose(proj_w_torch[:, :, 0, 0], (1, 0))         # (3*Cout, Cout)

    # GroupNorm affine params (rows 0..2 = branches, row 3 = project).
    gammas = 1.0 + 0.1 * jax.random.normal(k_g, (4, Cout), jnp.float32)
    betas = 0.1 * jax.random.normal(k_b, (4, Cout), jnp.float32)

    ref = jax.block_until_ready(
        ref_forward(x_nhwc, w_hwio, proj_w, gammas, betas, rates,
                    num_groups=num_groups))

    # 1) f32 compute path: strict correctness check (exercises 2 row tiles).
    out_f32 = jax.block_until_ready(
        aspp_share_forward(x_nhwc, w_hwio, proj_w, gammas, betas, rates,
                           num_groups=num_groups, compute_dtype=jnp.float32,
                           row_tile=8))
    assert out_f32.shape == (N, H, W, Cout), out_f32.shape
    err32 = float(jnp.max(jnp.abs(out_f32 - ref)))
    assert jnp.allclose(out_f32, ref, atol=2e-3, rtol=2e-3), err32

    # 2) bf16 matmul-operand path (fast path on v6e/v7x): looser tolerance;
    #    accumulation and GroupNorm statistics stay in f32.
    out_bf16 = jax.block_until_ready(
        aspp_share_forward(x_nhwc, w_hwio, proj_w, gammas, betas, rates,
                           num_groups=num_groups, compute_dtype=jnp.bfloat16,
                           row_tile=8))
    assert out_bf16.shape == (N, H, W, Cout), out_bf16.shape
    err16 = float(jnp.max(jnp.abs(out_bf16 - ref)))
    assert jnp.allclose(out_bf16, ref, atol=1e-1, rtol=1e-1), err16

    print("KERNEL_OK")
</pallas_src>

<mosaic_0001>
module attributes {stable_mosaic.version = 11 : i64} {
  func.func @_stats_kernel(%arg0: i32, %arg1: i32, %arg2: memref<1x22x22x4xf32, #tpu.memory_space<vmem>>, %arg3: memref<9x4x128xf32, #tpu.memory_space<vmem>>, %arg4: memref<1x6x128xf32, #tpu.memory_space<vmem>>) attributes {dimension_semantics = [#tpu.dimension_semantics<parallel>, #tpu.dimension_semantics<arbitrary>], iteration_bounds = array<i64: 2, 2>, scalar_prefetch = 0 : i64, scratch_operands = 0 : i64, tpu.core_type = #tpu.core_type<tc>, window_params = [{transform_indices = @transform_0, window_bounds = array<i64: 1, 22, 22, 4>}, {pipeline_mode = #tpu.pipeline_mode<synchronous>, transform_indices = @transform_1, window_bounds = array<i64: 9, 4, 128>}, {transform_indices = @transform_2, window_bounds = array<i64: 1, 6, 128>}]} {
    %c0_i32 = arith.constant 0 : i32
    %0 = arith.cmpi eq, %arg1, %c0_i32 : i32
    %1 = arith.extui %0 : i1 to i32
    %c0_i32_0 = arith.constant 0 : i32
    %2 = arith.cmpi ne, %1, %c0_i32_0 : i32
    scf.if %2 {
      %cst_114 = arith.constant 0.000000e+00 : f32
      %188 = vector.broadcast %cst_114 : f32 to vector<6x128xf32>
      %c0_115 = arith.constant 0 : index
      %c0_116 = arith.constant 0 : index
      %c0_117 = arith.constant 0 : index
      %189 = vector.load %arg4[%c0_115, %c0_116, %c0_117] : memref<1x6x128xf32, #tpu.memory_space<vmem>>, vector<1x6x128xf32>
      %190 = vector.shape_cast %189 : vector<1x6x128xf32> to vector<6x128xf32>
      %191 = vector.shape_cast %188 : vector<6x128xf32> to vector<1x6x128xf32>
      tpu.vector_store %arg4[%c0_115, %c0_116, %c0_117], %191 {strides = array<i32>} : memref<1x6x128xf32, #tpu.memory_space<vmem>>, vector<1x6x128xf32>,
    } else {
    }
    %c8_i32 = arith.constant 8 : i32
    %3 = arith.muli %arg1, %c8_i32 : i32
    %c0 = arith.constant 0 : index
    %4 = arith.index_cast %3 : i32 to index
    %c0_1 = arith.constant 0 : index
    %c0_2 = arith.constant 0 : index
    %5 = vector.load %arg2[%c0, %4, %c0_1, %c0_2] : memref<1x22x22x4xf32, #tpu.memory_space<vmem>>, vector<1x14x22x4xf32>
    %6 = vector.shape_cast %5 : vector<1x14x22x4xf32> to vector<14x22x4xf32>
    %7 = vector.extract_strided_slice %6 {offsets = [2, 2, 0], sizes = [8, 16, 4], strides = [1, 1, 1]} : vector<14x22x4xf32> to vector<8x16x4xf32>
    %8 = vector.shape_cast %7 : vector<8x16x4xf32> to vector<128x4xf32>
    %c0_3 = arith.constant 0 : index
    %c0_4 = arith.constant 0 : index
    %c0_5 = arith.constant 0 : index
    %9 = vector.load %arg3[%c0_3, %c0_4, %c0_5] : memref<9x4x128xf32, #tpu.memory_space<vmem>>, vector<1x4x128xf32>
    %10 = vector.shape_cast %9 : vector<1x4x128xf32> to vector<4x128xf32>
    %cst = arith.constant dense<0.000000e+00> : vector<128x128xf32>
    %11 = tpu.matmul %8, %10, %cst {dimension_numbers = #tpu.dot_dimension_numbers<[1], [0], [0], [1], [0, 0, 1, 1], [], []>} : vector<128x4xf32>, vector<4x128xf32>, vector<128x128xf32> -> vector<128x128xf32>
    %12 = vector.extract_strided_slice %6 {offsets = [2, 3, 0], sizes = [8, 16, 4], strides = [1, 1, 1]} : vector<14x22x4xf32> to vector<8x16x4xf32>
    %13 = vector.shape_cast %12 : vector<8x16x4xf32> to vector<128x4xf32>
    %c1 = arith.constant 1 : index
    %c0_6 = arith.constant 0 : index
    %c0_7 = arith.constant 0 : index
    %14 = vector.load %arg3[%c1, %c0_6, %c0_7] : memref<9x4x128xf32, #tpu.memory_space<vmem>>, vector<1x4x128xf32>
    %15 = vector.shape_cast %14 : vector<1x4x128xf32> to vector<4x128xf32>
    %cst_8 = arith.constant dense<0.000000e+00> : vector<128x128xf32>
    %16 = tpu.matmul %13, %15, %cst_8 {dimension_numbers = #tpu.dot_dimension_numbers<[1], [0], [0], [1], [0, 0, 1, 1], [], []>} : vector<128x4xf32>, vector<4x128xf32>, vector<128x128xf32> -> vector<128x128xf32>
    %17 = arith.addf %11, %16 : vector<128x128xf32>
    %18 = vector.extract_strided_slice %6 {offsets = [2, 4, 0], sizes = [8, 16, 4], strides = [1, 1, 1]} : vector<14x22x4xf32> to vector<8x16x4xf32>
    %19 = vector.shape_cast %18 : vector<8x16x4xf32> to vector<128x4xf32>
    %c2 = arith.constant 2 : index
    %c0_9 = arith.constant 0 : index
    %c0_10 = arith.constant 0 : index
    %20 = vector.load %arg3[%c2, %c0_9, %c0_10] : memref<9x4x128xf32, #tpu.memory_space<vmem>>, vector<1x4x128xf32>
    %21 = vector.shape_cast %20 : vector<1x4x128xf32> to vector<4x128xf32>
    %cst_11 = arith.constant dense<0.000000e+00> : vector<128x128xf32>
    %22 = tpu.matmul %19, %21, %cst_11 {dimension_numbers = #tpu.dot_dimension_numbers<[1], [0], [0], [1], [0, 0, 1, 1], [], []>} : vector<128x4xf32>, vector<4x128xf32>, vector<128x128xf32> -> vector<128x128xf32>
    %23 = arith.addf %17, %22 : vector<128x128xf32>
    %24 = vector.extract_strided_slice %6 {offsets = [3, 2, 0], sizes = [8, 16, 4], strides = [1, 1, 1]} : vector<14x22x4xf32> to vector<8x16x4xf32>
    %25 = vector.shape_cast %24 : vector<8x16x4xf32> to vector<128x4xf32>
    %c3 = arith.constant 3 : index
    %c0_12 = arith.constant 0 : index
    %c0_13 = arith.constant 0 : index
    %26 = vector.load %arg3[%c3, %c0_12, %c0_13] : memref<9x4x128xf32, #tpu.memory_space<vmem>>, vector<1x4x128xf32>
    %27 = vector.shape_cast %26 : vector<1x4x128xf32> to vector<4x128xf32>
    %cst_14 = arith.constant dense<0.000000e+00> : vector<128x128xf32>
    %28 = tpu.matmul %25, %27, %cst_14 {dimension_numbers = #tpu.dot_dimension_numbers<[1], [0], [0], [1], [0, 0, 1, 1], [], []>} : vector<128x4xf32>, vector<4x128xf32>, vector<128x128xf32> -> vector<128x128xf32>
    %29 = arith.addf %23, %28 : vector<128x128xf32>
    %30 = vector.extract_strided_slice %6 {offsets = [3, 3, 0], sizes = [8, 16, 4], strides = [1, 1, 1]} : vector<14x22x4xf32> to vector<8x16x4xf32>
    %31 = vector.shape_cast %30 : vector<8x16x4xf32> to vector<128x4xf32>
    %c4 = arith.constant 4 : index
    %c0_15 = arith.constant 0 : index
    %c0_16 = arith.constant 0 : index
    %32 = vector.load %arg3[%c4, %c0_15, %c0_16] : memref<9x4x128xf32, #tpu.memory_space<vmem>>, vector<1x4x128xf32>
    %33 = vector.shape_cast %32 : vector<1x4x128xf32> to vector<4x128xf32>
    %cst_17 = arith.constant dense<0.000000e+00> : vector<128x128xf32>
    %34 = tpu.matmul %31, %33, %cst_17 {dimension_numbers = #tpu.dot_dimension_numbers<[1], [0], [0], [1], [0, 0, 1, 1], [], []>} : vector<128x4xf32>, vector<4x128xf32>, vector<128x128xf32> -> vector<128x128xf32>
    %35 = arith.addf %29, %34 : vector<128x128xf32>
    %36 = vector.extract_strided_slice %6 {offsets = [3, 4, 0], sizes = [8, 16, 4], strides = [1, 1, 1]} : vector<14x22x4xf32> to vector<8x16x4xf32>
    %37 = vector.shape_cast %36 : vector<8x16x4xf32> to vector<128x4xf32>
    %c5 = arith.constant 5 : index
    %c0_18 = arith.constant 0 : index
    %c0_19 = arith.constant 0 : index
    %38 = vector.load %arg3[%c5, %c0_18, %c0_19] : memref<9x4x128xf32, #tpu.memory_space<vmem>>, vector<1x4x128xf32>
    %39 = vector.shape_cast %38 : vector<1x4x128xf32> to vector<4x128xf32>
    %cst_20 = arith.constant dense<0.000000e+00> : vector<128x128xf32>
    %40 = tpu.matmul %37, %39, %cst_20 {dimension_numbers = #tpu.dot_dimension_numbers<[1], [0], [0], [1], [0, 0, 1, 1], [], []>} : vector<128x4xf32>, vector<4x128xf32>, vector<128x128xf32> -> vector<128x128xf32>
    %41 = arith.addf %35, %40 : vector<128x128xf32>
    %42 = vector.extract_strided_slice %6 {offsets = [4, 2, 0], sizes = [8, 16, 4], strides = [1, 1, 1]} : vector<14x22x4xf32> to vector<8x16x4xf32>
    %43 = vector.shape_cast %42 : vector<8x16x4xf32> to vector<128x4xf32>
    %c6 = arith.constant 6 : index
    %c0_21 = arith.constant 0 : index
    %c0_22 = arith.constant 0 : index
    %44 = vector.load %arg3[%c6, %c0_21, %c0_22] : memref<9x4x128xf32, #tpu.memory_space<vmem>>, vector<1x4x128xf32>
    %45 = vector.shape_cast %44 : vector<1x4x128xf32> to vector<4x128xf32>
    %cst_23 = arith.constant dense<0.000000e+00> : vector<128x128xf32>
    %46 = tpu.matmul %43, %45, %cst_23 {dimension_numbers = #tpu.dot_dimension_numbers<[1], [0], [0], [1], [0, 0, 1, 1], [], []>} : vector<128x4xf32>, vector<4x128xf32>, vector<128x128xf32> -> vector<128x128xf32>
    %47 = arith.addf %41, %46 : vector<128x128xf32>
    %48 = vector.extract_strided_slice %6 {offsets = [4, 3, 0], sizes = [8, 16, 4], strides = [1, 1, 1]} : vector<14x22x4xf32> to vector<8x16x4xf32>
    %49 = vector.shape_cast %48 : vector<8x16x4xf32> to vector<128x4xf32>
    %c7 = arith.constant 7 : index
    %c0_24 = arith.constant 0 : index
    %c0_25 = arith.constant 0 : index
    %50 = vector.load %arg3[%c7, %c0_24, %c0_25] : memref<9x4x128xf32, #tpu.memory_space<vmem>>, vector<1x4x128xf32>
    %51 = vector.shape_cast %50 : vector<1x4x128xf32> to vector<4x128xf32>
    %cst_26 = arith.constant dense<0.000000e+00> : vector<128x128xf32>
    %52 = tpu.matmul %49, %51, %cst_26 {dimension_numbers = #tpu.dot_dimension_numbers<[1], [0], [0], [1], [0, 0, 1, 1], [], []>} : vector<128x4xf32>, vector<4x128xf32>, vector<128x128xf32> -> vector<128x128xf32>
    %53 = arith.addf %47, %52 : vector<128x128xf32>
    %54 = vector.extract_strided_slice %6 {offsets = [4, 4, 0], sizes = [8, 16, 4], strides = [1, 1, 1]} : vector<14x22x4xf32> to vector<8x16x4xf32>
    %55 = vector.shape_cast %54 : vector<8x16x4xf32> to vector<128x4xf32>
    %c8 = arith.constant 8 : index
    %c0_27 = arith.constant 0 : index
    %c0_28 = arith.constant 0 : index
    %56 = vector.load %arg3[%c8, %c0_27, %c0_28] : memref<9x4x128xf32, #tpu.memory_space<vmem>>, vector<1x4x128xf32>
    %57 = vector.shape_cast %56 : vector<1x4x128xf32> to vector<4x128xf32>
    %cst_29 = arith.constant dense<0.000000e+00> : vector<128x128xf32>
    %58 = tpu.matmul %55, %57, %cst_29 {dimension_numbers = #tpu.dot_dimension_numbers<[1], [0], [0], [1], [0, 0, 1, 1], [], []>} : vector<128x4xf32>, vector<4x128xf32>, vector<128x128xf32> -> vector<128x128xf32>
    %59 = arith.addf %53, %58 : vector<128x128xf32>
    %cst_30 = arith.constant dense<0.000000e+00> : vector<128xf32>
    %60 = vector.multi_reduction <add>, %59, %cst_30 [0] : vector<128x128xf32> to vector<128xf32>
    %61 = vector.shape_cast %60 : vector<128xf32> to vector<1x128xf32>
    %62 = arith.mulf %59, %59 : vector<128x128xf32>
    %cst_31 = arith.constant dense<0.000000e+00> : vector<128xf32>
    %63 = vector.multi_reduction <add>, %62, %cst_31 [0] : vector<128x128xf32> to vector<128xf32>
    %64 = vector.shape_cast %63 : vector<128xf32> to vector<1x128xf32>
    %65 = vector.extract_strided_slice %6 {offsets = [1, 1, 0], sizes = [8, 16, 4], strides = [1, 1, 1]} : vector<14x22x4xf32> to vector<8x16x4xf32>
    %66 = vector.shape_cast %65 : vector<8x16x4xf32> to vector<128x4xf32>
    %c0_32 = arith.constant 0 : index
    %c0_33 = arith.constant 0 : index
    %c0_34 = arith.constant 0 : index
    %67 = vector.load %arg3[%c0_32, %c0_33, %c0_34] : memref<9x4x128xf32, #tpu.memory_space<vmem>>, vector<1x4x128xf32>
    %68 = vector.shape_cast %67 : vector<1x4x128xf32> to vector<4x128xf32>
    %cst_35 = arith.constant dense<0.000000e+00> : vector<128x128xf32>
    %69 = tpu.matmul %66, %68, %cst_35 {dimension_numbers = #tpu.dot_dimension_numbers<[1], [0], [0], [1], [0, 0, 1, 1], [], []>} : vector<128x4xf32>, vector<4x128xf32>, vector<128x128xf32> -> vector<128x128xf32>
    %70 = vector.extract_strided_slice %6 {offsets = [1, 3, 0], sizes = [8, 16, 4], strides = [1, 1, 1]} : vector<14x22x4xf32> to vector<8x16x4xf32>
    %71 = vector.shape_cast %70 : vector<8x16x4xf32> to vector<128x4xf32>
    %c1_36 = arith.constant 1 : index
    %c0_37 = arith.constant 0 : index
    %c0_38 = arith.constant 0 : index
    %72 = vector.load %arg3[%c1_36, %c0_37, %c0_38] : memref<9x4x128xf32, #tpu.memory_space<vmem>>, vector<1x4x128xf32>
    %73 = vector.shape_cast %72 : vector<1x4x128xf32> to vector<4x128xf32>
    %cst_39 = arith.constant dense<0.000000e+00> : vector<128x128xf32>
    %74 = tpu.matmul %71, %73, %cst_39 {dimension_numbers = #tpu.dot_dimension_numbers<[1], [0], [0], [1], [0, 0, 1, 1], [], []>} : vector<128x4xf32>, vector<4x128xf32>, vector<128x128xf32> -> vector<128x128xf32>
    %75 = arith.addf %69, %74 : vector<128x128xf32>
    %76 = vector.extract_strided_slice %6 {offsets = [1, 5, 0], sizes = [8, 16, 4], strides = [1, 1, 1]} : vector<14x22x4xf32> to vector<8x16x4xf32>
    %77 = vector.shape_cast %76 : vector<8x16x4xf32> to vector<128x4xf32>
    %c2_40 = arith.constant 2 : index
    %c0_41 = arith.constant 0 : index
    %c0_42 = arith.constant 0 : index
    %78 = vector.load %arg3[%c2_40, %c0_41, %c0_42] : memref<9x4x128xf32, #tpu.memory_space<vmem>>, vector<1x4x128xf32>
    %79 = vector.shape_cast %78 : vector<1x4x128xf32> to vector<4x128xf32>
    %cst_43 = arith.constant dense<0.000000e+00> : vector<128x128xf32>
    %80 = tpu.matmul %77, %79, %cst_43 {dimension_numbers = #tpu.dot_dimension_numbers<[1], [0], [0], [1], [0, 0, 1, 1], [], []>} : vector<128x4xf32>, vector<4x128xf32>, vector<128x128xf32> -> vector<128x128xf32>
    %81 = arith.addf %75, %80 : vector<128x128xf32>
    %82 = vector.extract_strided_slice %6 {offsets = [3, 1, 0], sizes = [8, 16, 4], strides = [1, 1, 1]} : vector<14x22x4xf32> to vector<8x16x4xf32>
    %83 = vector.shape_cast %82 : vector<8x16x4xf32> to vector<128x4xf32>
    %c3_44 = arith.constant 3 : index
    %c0_45 = arith.constant 0 : index
    %c0_46 = arith.constant 0 : index
    %84 = vector.load %arg3[%c3_44, %c0_45, %c0_46] : memref<9x4x128xf32, #tpu.memory_space<vmem>>, vector<1x4x128xf32>
    %85 = vector.shape_cast %84 : vector<1x4x128xf32> to vector<4x128xf32>
    %cst_47 = arith.constant dense<0.000000e+00> : vector<128x128xf32>
    %86 = tpu.matmul %83, %85, %cst_47 {dimension_numbers = #tpu.dot_dimension_numbers<[1], [0], [0], [1], [0, 0, 1, 1], [], []>} : vector<128x4xf32>, vector<4x128xf32>, vector<128x128xf32> -> vector<128x128xf32>
    %87 = arith.addf %81, %86 : vector<128x128xf32>
    %88 = vector.extract_strided_slice %6 {offsets = [3, 3, 0], sizes = [8, 16, 4], strides = [1, 1, 1]} : vector<14x22x4xf32> to vector<8x16x4xf32>
    %89 = vector.shape_cast %88 : vector<8x16x4xf32> to vector<128x4xf32>
    %c4_48 = arith.constant 4 : index
    %c0_49 = arith.constant 0 : index
    %c0_50 = arith.constant 0 : index
    %90 = vector.load %arg3[%c4_48, %c0_49, %c0_50] : memref<9x4x128xf32, #tpu.memory_space<vmem>>, vector<1x4x128xf32>
    %91 = vector.shape_cast %90 : vector<1x4x128xf32> to vector<4x128xf32>
    %cst_51 = arith.constant dense<0.000000e+00> : vector<128x128xf32>
    %92 = tpu.matmul %89, %91, %cst_51 {dimension_numbers = #tpu.dot_dimension_numbers<[1], [0], [0], [1], [0, 0, 1, 1], [], []>} : vector<128x4xf32>, vector<4x128xf32>, vector<128x128xf32> -> vector<128x128xf32>
    %93 = arith.addf %87, %92 : vector<128x128xf32>
    %94 = vector.extract_strided_slice %6 {offsets = [3, 5, 0], sizes = [8, 16, 4], strides = [1, 1, 1]} : vector<14x22x4xf32> to vector<8x16x4xf32>
    %95 = vector.shape_cast %94 : vector<8x16x4xf32> to vector<128x4xf32>
    %c5_52 = arith.constant 5 : index
    %c0_53 = arith.constant 0 : index
    %c0_54 = arith.constant 0 : index
    %96 = vector.load %arg3[%c5_52, %c0_53, %c0_54] : memref<9x4x128xf32, #tpu.memory_space<vmem>>, vector<1x4x128xf32>
    %97 = vector.shape_cast %96 : vector<1x4x128xf32> to vector<4x128xf32>
    %cst_55 = arith.constant dense<0.000000e+00> : vector<128x128xf32>
    %98 = tpu.matmul %95, %97, %cst_55 {dimension_numbers = #tpu.dot_dimension_numbers<[1], [0], [0], [1], [0, 0, 1, 1], [], []>} : vector<128x4xf32>, vector<4x128xf32>, vector<128x128xf32> -> vector<128x128xf32>
    %99 = arith.addf %93, %98 : vector<128x128xf32>
    %100 = vector.extract_strided_slice %6 {offsets = [5, 1, 0], sizes = [8, 16, 4], strides = [1, 1, 1]} : vector<14x22x4xf32> to vector<8x16x4xf32>
    %101 = vector.shape_cast %100 : vector<8x16x4xf32> to vector<128x4xf32>
    %c6_56 = arith.constant 6 : index
    %c0_57 = arith.constant 0 : index
    %c0_58 = arith.constant 0 : index
    %102 = vector.load %arg3[%c6_56, %c0_57, %c0_58] : memref<9x4x128xf32, #tpu.memory_space<vmem>>, vector<1x4x128xf32>
    %103 = vector.shape_cast %102 : vector<1x4x128xf32> to vector<4x128xf32>
    %cst_59 = arith.constant dense<0.000000e+00> : vector<128x128xf32>
    %104 = tpu.matmul %101, %103, %cst_59 {dimension_numbers = #tpu.dot_dimension_numbers<[1], [0], [0], [1], [0, 0, 1, 1], [], []>} : vector<128x4xf32>, vector<4x128xf32>, vector<128x128xf32> -> vector<128x128xf32>
    %105 = arith.addf %99, %104 : vector<128x128xf32>
    %106 = vector.extract_strided_slice %6 {offsets = [5, 3, 0], sizes = [8, 16, 4], strides = [1, 1, 1]} : vector<14x22x4xf32> to vector<8x16x4xf32>
    %107 = vector.shape_cast %106 : vector<8x16x4xf32> to vector<128x4xf32>
    %c7_60 = arith.constant 7 : index
    %c0_61 = arith.constant 0 : index
    %c0_62 = arith.constant 0 : index
    %108 = vector.load %arg3[%c7_60, %c0_61, %c0_62] : memref<9x4x128xf32, #tpu.memory_space<vmem>>, vector<1x4x128xf32>
    %109 = vector.shape_cast %108 : vector<1x4x128xf32> to vector<4x128xf32>
    %cst_63 = arith.constant dense<0.000000e+00> : vector<128x128xf32>
    %110 = tpu.matmul %107, %109, %cst_63 {dimension_numbers = #tpu.dot_dimension_numbers<[1], [0], [0], [1], [0, 0, 1, 1], [], []>} : vector<128x4xf32>, vector<4x128xf32>, vector<128x128xf32> -> vector<128x128xf32>
    %111 = arith.addf %105, %110 : vector<128x128xf32>
    %112 = vector.extract_strided_slice %6 {offsets = [5, 5, 0], sizes = [8, 16, 4], strides = [1, 1, 1]} : vector<14x22x4xf32> to vector<8x16x4xf32>
    %113 = vector.shape_cast %112 : vector<8x16x4xf32> to vector<128x4xf32>
    %c8_64 = arith.constant 8 : index
    %c0_65 = arith.constant 0 : index
    %c0_66 = arith.constant 0 : index
    %114 = vector.load %arg3[%c8_64, %c0_65, %c0_66] : memref<9x4x128xf32, #tpu.memory_space<vmem>>, vector<1x4x128xf32>
    %115 = vector.shape_cast %114 : vector<1x4x128xf32> to vector<4x128xf32>
    %cst_67 = arith.constant dense<0.000000e+00> : vector<128x128xf32>
    %116 = tpu.matmul %113, %115, %cst_67 {dimension_numbers = #tpu.dot_dimension_numbers<[1], [0], [0], [1], [0, 0, 1, 1], [], []>} : vector<128x4xf32>, vector<4x128xf32>, vector<128x128xf32> -> vector<128x128xf32>
    %117 = arith.addf %111, %116 : vector<128x128xf32>
    %cst_68 = arith.constant dense<0.000000e+00> : vector<128xf32>
    %118 = vector.multi_reduction <add>, %117, %cst_68 [0] : vector<128x128xf32> to vector<128xf32>
    %119 = vector.shape_cast %118 : vector<128xf32> to vector<1x128xf32>
    %120 = arith.mulf %117, %117 : vector<128x128xf32>
    %cst_69 = arith.constant dense<0.000000e+00> : vector<128xf32>
    %121 = vector.multi_reduction <add>, %120, %cst_69 [0] : vector<128x128xf32> to vector<128xf32>
    %122 = vector.shape_cast %121 : vector<128xf32> to vector<1x128xf32>
    %123 = vector.extract_strided_slice %6 {offsets = [0, 0, 0], sizes = [8, 16, 4], strides = [1, 1, 1]} : vector<14x22x4xf32> to vector<8x16x4xf32>
    %124 = vector.shape_cast %123 : vector<8x16x4xf32> to vector<128x4xf32>
    %c0_70 = arith.constant 0 : index
    %c0_71 = arith.constant 0 : index
    %c0_72 = arith.constant 0 : index
    %125 = vector.load %arg3[%c0_70, %c0_71, %c0_72] : memref<9x4x128xf32, #tpu.memory_space<vmem>>, vector<1x4x128xf32>
    %126 = vector.shape_cast %125 : vector<1x4x128xf32> to vector<4x128xf32>
    %cst_73 = arith.constant dense<0.000000e+00> : vector<128x128xf32>
    %127 = tpu.matmul %124, %126, %cst_73 {dimension_numbers = #tpu.dot_dimension_numbers<[1], [0], [0], [1], [0, 0, 1, 1], [], []>} : vector<128x4xf32>, vector<4x128xf32>, vector<128x128xf32> -> vector<128x128xf32>
    %128 = vector.extract_strided_slice %6 {offsets = [0, 3, 0], sizes = [8, 16, 4], strides = [1, 1, 1]} : vector<14x22x4xf32> to vector<8x16x4xf32>
    %129 = vector.shape_cast %128 : vector<8x16x4xf32> to vector<128x4xf32>
    %c1_74 = arith.constant 1 : index
    %c0_75 = arith.constant 0 : index
    %c0_76 = arith.constant 0 : index
    %130 = vector.load %arg3[%c1_74, %c0_75, %c0_76] : memref<9x4x128xf32, #tpu.memory_space<vmem>>, vector<1x4x128xf32>
    %131 = vector.shape_cast %130 : vector<1x4x128xf32> to vector<4x128xf32>
    %cst_77 = arith.constant dense<0.000000e+00> : vector<128x128xf32>
    %132 = tpu.matmul %129, %131, %cst_77 {dimension_numbers = #tpu.dot_dimension_numbers<[1], [0], [0], [1], [0, 0, 1, 1], [], []>} : vector<128x4xf32>, vector<4x128xf32>, vector<128x128xf32> -> vector<128x128xf32>
    %133 = arith.addf %127, %132 : vector<128x128xf32>
    %134 = vector.extract_strided_slice %6 {offsets = [0, 6, 0], sizes = [8, 16, 4], strides = [1, 1, 1]} : vector<14x22x4xf32> to vector<8x16x4xf32>
    %135 = vector.shape_cast %134 : vector<8x16x4xf32> to vector<128x4xf32>
    %c2_78 = arith.constant 2 : index
    %c0_79 = arith.constant 0 : index
    %c0_80 = arith.constant 0 : index
    %136 = vector.load %arg3[%c2_78, %c0_79, %c0_80] : memref<9x4x128xf32, #tpu.memory_space<vmem>>, vector<1x4x128xf32>
    %137 = vector.shape_cast %136 : vector<1x4x128xf32> to vector<4x128xf32>
    %cst_81 = arith.constant dense<0.000000e+00> : vector<128x128xf32>
    %138 = tpu.matmul %135, %137, %cst_81 {dimension_numbers = #tpu.dot_dimension_numbers<[1], [0], [0], [1], [0, 0, 1, 1], [], []>} : vector<128x4xf32>, vector<4x128xf32>, vector<128x128xf32> -> vector<128x128xf32>
    %139 = arith.addf %133, %138 : vector<128x128xf32>
    %140 = vector.extract_strided_slice %6 {offsets = [3, 0, 0], sizes = [8, 16, 4], strides = [1, 1, 1]} : vector<14x22x4xf32> to vector<8x16x4xf32>
    %141 = vector.shape_cast %140 : vector<8x16x4xf32> to vector<128x4xf32>
    %c3_82 = arith.constant 3 : index
    %c0_83 = arith.constant 0 : index
    %c0_84 = arith.constant 0 : index
    %142 = vector.load %arg3[%c3_82, %c0_83, %c0_84] : memref<9x4x128xf32, #tpu.memory_space<vmem>>, vector<1x4x128xf32>
    %143 = vector.shape_cast %142 : vector<1x4x128xf32> to vector<4x128xf32>
    %cst_85 = arith.constant dense<0.000000e+00> : vector<128x128xf32>
    %144 = tpu.matmul %141, %143, %cst_85 {dimension_numbers = #tpu.dot_dimension_numbers<[1], [0], [0], [1], [0, 0, 1, 1], [], []>} : vector<128x4xf32>, vector<4x128xf32>, vector<128x128xf32> -> vector<128x128xf32>
    %145 = arith.addf %139, %144 : vector<128x128xf32>
    %146 = vector.extract_strided_slice %6 {offsets = [3, 3, 0], sizes = [8, 16, 4], strides = [1, 1, 1]} : vector<14x22x4xf32> to vector<8x16x4xf32>
    %147 = vector.shape_cast %146 : vector<8x16x4xf32> to vector<128x4xf32>
    %c4_86 = arith.constant 4 : index
    %c0_87 = arith.constant 0 : index
    %c0_88 = arith.constant 0 : index
    %148 = vector.load %arg3[%c4_86, %c0_87, %c0_88] : memref<9x4x128xf32, #tpu.memory_space<vmem>>, vector<1x4x128xf32>
    %149 = vector.shape_cast %148 : vector<1x4x128xf32> to vector<4x128xf32>
    %cst_89 = arith.constant dense<0.000000e+00> : vector<128x128xf32>
    %150 = tpu.matmul %147, %149, %cst_89 {dimension_numbers = #tpu.dot_dimension_numbers<[1], [0], [0], [1], [0, 0, 1, 1], [], []>} : vector<128x4xf32>, vector<4x128xf32>, vector<128x128xf32> -> vector<128x128xf32>
    %151 = arith.addf %145, %150 : vector<128x128xf32>
    %152 = vector.extract_strided_slice %6 {offsets = [3, 6, 0], sizes = [8, 16, 4], strides = [1, 1, 1]} : vector<14x22x4xf32> to vector<8x16x4xf32>
    %153 = vector.shape_cast %152 : vector<8x16x4xf32> to vector<128x4xf32>
    %c5_90 = arith.constant 5 : index
    %c0_91 = arith.constant 0 : index
    %c0_92 = arith.constant 0 : index
    %154 = vector.load %arg3[%c5_90, %c0_91, %c0_92] : memref<9x4x128xf32, #tpu.memory_space<vmem>>, vector<1x4x128xf32>
    %155 = vector.shape_cast %154 : vector<1x4x128xf32> to vector<4x128xf32>
    %cst_93 = arith.constant dense<0.000000e+00> : vector<128x128xf32>
    %156 = tpu.matmul %153, %155, %cst_93 {dimension_numbers = #tpu.dot_dimension_numbers<[1], [0], [0], [1], [0, 0, 1, 1], [], []>} : vector<128x4xf32>, vector<4x128xf32>, vector<128x128xf32> -> vector<128x128xf32>
    %157 = arith.addf %151, %156 : vector<128x128xf32>
    %158 = vector.extract_strided_slice %6 {offsets = [6, 0, 0], sizes = [8, 16, 4], strides = [1, 1, 1]} : vector<14x22x4xf32> to vector<8x16x4xf32>
    %159 = vector.shape_cast %158 : vector<8x16x4xf32> to vector<128x4xf32>
    %c6_94 = arith.constant 6 : index
    %c0_95 = arith.constant 0 : index
    %c0_96 = arith.constant 0 : index
    %160 = vector.load %arg3[%c6_94, %c0_95, %c0_96] : memref<9x4x128xf32, #tpu.memory_space<vmem>>, vector<1x4x128xf32>
    %161 = vector.shape_cast %160 : vector<1x4x128xf32> to vector<4x128xf32>
    %cst_97 = arith.constant dense<0.000000e+00> : vector<128x128xf32>
    %162 = tpu.matmul %159, %161, %cst_97 {dimension_numbers = #tpu.dot_dimension_numbers<[1], [0], [0], [1], [0, 0, 1, 1], [], []>} : vector<128x4xf32>, vector<4x128xf32>, vector<128x128xf32> -> vector<128x128xf32>
    %163 = arith.addf %157, %162 : vector<128x128xf32>
    %164 = vector.extract_strided_slice %6 {offsets = [6, 3, 0], sizes = [8, 16, 4], strides = [1, 1, 1]} : vector<14x22x4xf32> to vector<8x16x4xf32>
    %165 = vector.shape_cast %164 : vector<8x16x4xf32> to vector<128x4xf32>
    %c7_98 = arith.constant 7 : index
    %c0_99 = arith.constant 0 : index
    %c0_100 = arith.constant 0 : index
    %166 = vector.load %arg3[%c7_98, %c0_99, %c0_100] : memref<9x4x128xf32, #tpu.memory_space<vmem>>, vector<1x4x128xf32>
    %167 = vector.shape_cast %166 : vector<1x4x128xf32> to vector<4x128xf32>
    %cst_101 = arith.constant dense<0.000000e+00> : vector<128x128xf32>
    %168 = tpu.matmul %165, %167, %cst_101 {dimension_numbers = #tpu.dot_dimension_numbers<[1], [0], [0], [1], [0, 0, 1, 1], [], []>} : vector<128x4xf32>, vector<4x128xf32>, vector<128x128xf32> -> vector<128x128xf32>
    %169 = arith.addf %163, %168 : vector<128x128xf32>
    %170 = vector.extract_strided_slice %6 {offsets = [6, 6, 0], sizes = [8, 16, 4], strides = [1, 1, 1]} : vector<14x22x4xf32> to vector<8x16x4xf32>
    %171 = vector.shape_cast %170 : vector<8x16x4xf32> to vector<128x4xf32>
    %c8_102 = arith.constant 8 : index
    %c0_103 = arith.constant 0 : index
    %c0_104 = arith.constant 0 : index
    %172 = vector.load %arg3[%c8_102, %c0_103, %c0_104] : memref<9x4x128xf32, #tpu.memory_space<vmem>>, vector<1x4x128xf32>
    %173 = vector.shape_cast %172 : vector<1x4x128xf32> to vector<4x128xf32>
    %cst_105 = arith.constant dense<0.000000e+00> : vector<128x128xf32>
    %174 = tpu.matmul %171, %173, %cst_105 {dimension_numbers = #tpu.dot_dimension_numbers<[1], [0], [0], [1], [0, 0, 1, 1], [], []>} : vector<128x4xf32>, vector<4x128xf32>, vector<128x128xf32> -> vector<128x128xf32>
    %175 = arith.addf %169, %174 : vector<128x128xf32>
    %cst_106 = arith.constant dense<0.000000e+00> : vector<128xf32>
    %176 = vector.multi_reduction <add>, %175, %cst_106 [0] : vector<128x128xf32> to vector<128xf32>
    %177 = vector.shape_cast %176 : vector<128xf32> to vector<1x128xf32>
    %178 = arith.mulf %175, %175 : vector<128x128xf32>
    %cst_107 = arith.constant dense<0.000000e+00> : vector<128xf32>
    %179 = vector.multi_reduction <add>, %178, %cst_107 [0] : vector<128x128xf32> to vector<128xf32>
    %180 = vector.shape_cast %179 : vector<128xf32> to vector<1x128xf32>
    %c0_108 = arith.constant 0 : index
    %c0_109 = arith.constant 0 : index
    %c0_110 = arith.constant 0 : index
    %181 = vector.load %arg4[%c0_108, %c0_109, %c0_110] : memref<1x6x128xf32, #tpu.memory_space<vmem>>, vector<1x6x128xf32>
    %182 = vector.shape_cast %181 : vector<1x6x128xf32> to vector<6x128xf32>
    %183 = tpu.concatenate %61, %119, %177, %64, %122, %180 in 0 : vector<1x128xf32>, vector<1x128xf32>, vector<1x128xf32>, vector<1x128xf32>, vector<1x128xf32>, vector<1x128xf32> -> vector<6x128xf32>
    %184 = arith.addf %182, %183 : vector<6x128xf32>
    %c0_111 = arith.constant 0 : index
    %c0_112 = arith.constant 0 : index
    %c0_113 = arith.constant 0 : index
    %185 = vector.load %arg4[%c0_111, %c0_112, %c0_113] : memref<1x6x128xf32, #tpu.memory_space<vmem>>, vector<1x6x128xf32>
    %186 = vector.shape_cast %185 : vector<1x6x128xf32> to vector<6x128xf32>
    %187 = vector.shape_cast %184 : vector<6x128xf32> to vector<1x6x128xf32>
    tpu.vector_store %arg4[%c0_111, %c0_112, %c0_113], %187 {strides = array<i32>} : memref<1x6x128xf32, #tpu.memory_space<vmem>>, vector<1x6x128xf32>,
    return
  }
  func.func @transform_0(%arg0: i32, %arg1: i32) -> (i32, i32, i32, i32) {
    %c0_i32 = arith.constant 0 : i32
    %c0_i32_0 = arith.constant 0 : i32
    %c0_i32_1 = arith.constant 0 : i32
    %c0_i32_2 = arith.constant 0 : i32
    return %arg0, %c0_i32, %c0_i32_0, %c0_i32_1 : i32, i32, i32, i32
  }
  func.func @transform_1(%arg0: i32, %arg1: i32) -> (i32, i32, i32) {
    %c0_i32 = arith.constant 0 : i32
    %c0_i32_0 = arith.constant 0 : i32
    %c0_i32_1 = arith.constant 0 : i32
    %c0_i32_2 = arith.constant 0 : i32
    return %c0_i32, %c0_i32_0, %c0_i32_1 : i32, i32, i32
  }
  func.func @transform_2(%arg0: i32, %arg1: i32) -> (i32, i32, i32) {
    %c0_i32 = arith.constant 0 : i32
    %c0_i32_0 = arith.constant 0 : i32
    %c0_i32_1 = arith.constant 0 : i32
    return %arg0, %c0_i32, %c0_i32_0 : i32, i32, i32
  }
}

</mosaic_0001>

<bundles_post_ra>
// kernel: tpu_custom_call.1
= control target key start
LH: loop header
LB: loop body
LE: loop exit
PB: predicated region body
PF: predicated region fallthrough
CT: control target
= control target key end

     0   :  { %s7246_s9 = smov 0   ;;  %s7248_s10 = smov 0   ;;  %s9100_s0 = inlined_call_operand.vmem [shape: f32[2,22,22,4], index: 0, kind: input, shape index: {}]   ;;  %s9101_s1 = inlined_call_operand.vmem [shape: f32[9,4,128], index: 1, kind: input, shape index: {}]   ;;  %s9102_s2 = inlined_call_operand.vmem [shape: f32[2,6,128], index: 2, kind: output, shape index: {}]  }
   0x1   :  { %s7250_s11 = smov 0   ;;  %s7252_s12 = smov 0  }
   0x2   :  { %s7254_s13 = smov 0  }
   0x3 LB: > { %s21_s14 = sadd.s32 1, %s7220_s11  ;;  %s24_s15 = sadd.s32 1, %s7224_s12  ;;  %s7228_s13 = sphi %s7254_s13, %s12_s13   ;;  %s7224_s12 = sphi %s7252_s12, %s9235_s12   ;;  %s7220_s11 = sphi %s7250_s11, %s9234_s11   ;;  %s7216_s10 = sphi %s7248_s10, %s9233_s10   ;;  %s7212_s9 = sphi %s7246_s9, %s9232_s9  }
   0x4   : > { %p22_p0 = scmp.ge.s32.totalorder %s21_s14, 2  ;;  %p5215_p1 = scmp.ge.s32.totalorder %s7228_s13, 1 }
   0x5   : > { %p124_p2 = scmp.lt.s32.totalorder %s7228_s13, 5 }
   0x6   : > { %s9237_s14 = smov (%p22_p0, %s21_s14), 0  ;;  %s9239_s15 = smov (!%p22_p0, %s24_s15), %s7224_s12 }
   0x7   : > { %p125_p3 = pnand %p5215_p1, %p124_p2  ;;  %p26_p4 = scmp.ge.s32.totalorder %s9239_s15, 2 }
   0x9   : > { %s9241_s15 = smov (%p26_p4, %s9239_s15), 0  ;;  %128 = sbr.rel (%p125_p3) target bundleno = 669 (0x29d), region = 28 }
  0x10   : > { %p145_p5 = scmp.lt.s32.totalorder %s7216_s10, 1  ;;  %p5218_p6 = scmp.ne.s32.totalorder %s7212_s9, 0 }
  0x11   : > { %v7230_v0 = vmov (!%p5218_p6), 0.0  }
  0x12   : > { %s9243_s10 = smov (!%p145_p5, %s7216_s10), 1  ;;  %157 = sbr.rel (%p5218_p6) target bundleno = 25 (0x19), region = 32 }
  0x13   : > { %s7117_s16 = smul.u32 528, %s9243_s10  ;;  %s5217_s17 = sshll.u32 %s9243_s10, 3 }
  0x14   : > { %s7281_s20 = scalar_lea.vmem %s9102_s2, %s5217_s17 }
  0x15   : > { %s149_s23 = scalar_lea.vmem %s9100_s0, %s7117_s16  ;;  %158 = vst [vmem:[%s7281_s20] sm:$0x3f] (!%p5218_p6), %v7230_v0 }
  0x19 PF: > { %v7291_v1 = vld [vmem:[%s9101_s1 + $0x4] sm:$0xf]  ;;  %vm346_vm0 = vcmask 1043456   ;;  %v7296_v2 = vld [vmem:[%s9101_s1 + $0xc] sm:$0xf]  ;;  %s5220_s28 = smul.u32 192, %s7212_s9 }
  0x1a   : > { %6081 = vmatprep.subr.msk.mxu1 %vm346_vm0, %v7291_v1  ;;  %6159 = vmatprep.subr.msk.mxu0 %vm346_vm0, %v7296_v2  ;;  %v7306_v3 = vld [vmem:[%s9101_s1] sm:$0xf]  ;;  %v5310_v4 = vld [vmem:[%s9101_s1 + $0x14] sm:$0xf]  ;;  %vm270_vm1 = vcmask 1044480   ;;  %vm313_vm2 = vcmask 31744  }
  0x1b   : > { %6082 = vmatpush3.msk.msra.mxu1 %vm346_vm0, %v7291_v1  ;;  %s7310_s3 = scalar_lea.vmem %s149_s23, %s5220_s28  ;;  %6160 = vmatpush3.msk.msra.mxu0 %vm346_vm0, %v7296_v2  ;;  %vm228_vm3 = vcmask 1045504   ;;  %v7395_v35 = vld [vmem:[%s9101_s1 + $0x18] sm:$0xf]  ;;  %v7400_v36 = vld [vmem:[%s9101_s1 + $0x8] sm:$0xf]  ;;  %vm3933_vm4 = vcmask 1041408  }
  0x1c   : > { %v7318_v5 = vld [vmem:[%s7310_s3 + $0x30] sm:$0xff]  ;;  %v7321_v6 = vld [vmem:[%s7310_s3 + $0x38] sm:$0xff]  ;;  %6107 = vmatprep.subr.msk.mxu1 %vm346_vm0, %v7306_v3  ;;  %v7326_v7 = vld [vmem:[%s7310_s3 + $0x48] sm:$0xff]  ;;  %6211 = vmatprep.subr.msk.mxu0 %vm346_vm0, %v5310_v4  ;;  %vm2030_vm5 = vcmask 1046528   ;;  %vm2402_vm6 = vcmask 1042432   ;;  %vm5137_vm7 = vcmask 1040384  }
  0x1d   : > { %9160 = vst [vmem:[#allocation2_spill] sm:$0xff] %v7326_v7  ;;  %v271_v8 = vrot.slane %v7318_v5, 3  ;;  %v272_v9 = vrot.slane %v7321_v6, 3  ;;  %v7332_v10 = vld [vmem:[%s7310_s3 + $0x50] sm:$0xff]  ;;  %v234_v11 = vrot.slane %v7326_v7, 2  ;;  %v276_v16 = vrot.slane %v7326_v7, 3 }
  0x1e   : > { %9161 = vst [vmem:[#allocation3_spill] sm:$0xff] %v7332_v10  ;;  %v7336_v12 = vld [vmem:[%s7310_s3 + $0x40] sm:$0x3f]  ;;  %v235_v13 = vrot.slane %v7332_v10, 2  ;;  %v7341_v15 = vld [vmem:[%s7310_s3 + $0x58] sm:$0x3f] }
  0x1f   : > { %v274_v14 = vrot.slane %v7336_v12, 3  ;;  %9162 = vst [vmem:[#allocation4_spill] sm:$0xff] %v7341_v15  ;;  %v277_v17 = vrot.slane %v7332_v10, 3  ;;  %v7346_v18 = vsel %vm270_vm1, %v271_v8, %v272_v9  ;;  %v237_v19 = vrot.slane %v7341_v15, 2  ;;  %v7350_v20 = vld [vmem:[%s7310_s3 + $0x60] sm:$0xff]  ;;  %v7353_v21 = vld [vmem:[%s7310_s3 + $0x68] sm:$0xff] }
  0x20   : > { %9163 = vst [vmem:[#allocation5_spill] sm:$0xff] %v7350_v20  ;;  %9164 = vst [vmem:[#allocation6_spill] sm:$0xff] %v7353_v21  ;;  %v279_v22 = vrot.slane %v7341_v15, 3  ;;  %v7357_v23 = vld [vmem:[%s7310_s3 + $0x70] sm:$0x3f]  ;;  %6083 = vmatprep.mubr.msk.f32.mxu1 %vm313_vm2, %v7346_v18  ;;  %v7362_v24 = vsel %vm228_vm3, %v234_v11, %v235_v13  ;;  %v239_v27 = vrot.slane %v7350_v20, 2 }
  0x21   : > { %9165 = vst [vmem:[#allocation7_spill] sm:$0xff] %v7357_v23  ;;  %v7365_v25 = vsel %vm270_vm1, %v272_v9, %v274_v14  ;;  %v7368_v26 = vsel %vm270_vm1, %v276_v16, %v277_v17  ;;  %v7372_v28 = vld [vmem:[%s7310_s3 + $0x78] sm:$0xff]  ;;  %v7375_v29 = vld [vmem:[%s7310_s3 + $0x80] sm:$0xff]  ;;  %v7378_v30 = vld [vmem:[%s7310_s3 + $0x88] sm:$0x3f]  ;;  %6161 = vmatprep.mubr.msk.f32.mxu0 %vm313_vm2, %v7362_v24  ;;  %v7385_v31 = vsel %vm228_vm3, %v235_v13, %v237_v19  ;;  %v240_v32 = vrot.slane %v7353_v21, 2 }
  0x22   : > { %9166 = vst [vmem:[#allocation8_spill] sm:$0xff] %v7372_v28  ;;  %9167 = vst [vmem:[#allocation9_spill] sm:$0xff] %v7375_v29  ;;  %6084 = vmatmul.mubr.msk.f32.vlgmr.msra.gmra.mrb[0].mxu1 %vm313_vm2, %v7365_v25  ;;  %v7389_v33 = vsel %vm270_vm1, %v277_v17, %v279_v22  ;;  %v242_v34 = vrot.slane %v7357_v23, 2  ;;  %6162 = vmatmul.mubr.msk.f32.vlgmr.msra.gmra.mrb[0].mxu0 %vm313_vm2, %v7385_v31  ;;  %v281_v37 = vrot.slane %v7350_v20, 3  ;;  %v282_v38 = vrot.slane %v7353_v21, 3  ;;  %v7411_v41 = vld [vmem:[%s7310_s3 + $0x90] sm:$0xff] }
  0x23   : > { %9168 = vst [vmem:[#allocation10_spill] sm:$0xff] %v7378_v30  ;;  %6108 = vmatpush3.msk.msra.mxu1 %vm346_vm0, %v7306_v3  ;;  %v244_v39 = vrot.slane %v7372_v28, 2  ;;  %v245_v40 = vrot.slane %v7375_v29, 2  ;;  %9169 = vst [vmem:[#allocation11_spill] sm:$0xff] %v7411_v41  ;;  %v7414_v42 = vld [vmem:[%s7310_s3 + $0x98] sm:$0xff]  ;;  %6212 = vmatpush3.msk.msra.mxu0 %vm346_vm0, %v5310_v4  ;;  %v7420_v43 = vsel %vm228_vm3, %v239_v27, %v240_v32  ;;  %v284_v45 = vrot.slane %v7357_v23, 3 }
  0x24   : > { %9170 = vst [vmem:[#allocation12_spill] sm:$0xff] %v7414_v42  ;;  %6086 = vmatprep.mubr.msk.f32.mxu1 %vm313_vm2, %v7368_v26  ;;  %v7423_v44 = vsel %vm228_vm3, %v240_v32, %v242_v34  ;;  %v247_v46 = vrot.slane %v7378_v30, 2  ;;  %6164 = vmatprep.mubr.msk.f32.mxu0 %vm313_vm2, %v7420_v43  ;;  %v7430_v47 = vsel %vm270_vm1, %v281_v37, %v282_v38  ;;  %v286_v49 = vrot.slane %v7372_v28, 3  ;;  %v7438_v51 = vld [vmem:[%s7310_s3 + $0xa0] sm:$0x3f]  ;;  %v7473_v0 = vld [vmem:[%s7310_s3 + $0xa8] sm:$0xff] }
  0x25   : > { %v7433_v48 = vsel %vm228_vm3, %v244_v39, %v245_v40  ;;  %v287_v50 = vrot.slane %v7375_v29, 3  ;;  %9171 = vst [vmem:[#allocation13_spill] sm:$0xff] %v7438_v51  ;;  %6237 = vmatprep.subr.msk.mxu0 %vm346_vm0, %v7395_v35  ;;  %v249_v52 = vrot.slane %v7411_v41, 2  ;;  %v250_v53 = vrot.slane %v7414_v42, 2  ;;  %6133 = vmatprep.subr.msk.mxu1 %vm346_vm0, %v7400_v36  ;;  %v7476_v4 = vld [vmem:[%s7310_s3 + $0xb0] sm:$0xff]  ;;  %v7508_v34 = vld [vmem:[%s7310_s3 + $0xc0] sm:$0xff] }
  0x26   : > { %6087 = vmatmul.mubr.msk.f32.gmra.mrb[2].mxu1 %vm313_vm2, %v7389_v33  ;;  %6165 = vmatmul.mubr.msk.f32.gmra.mrb[2].mxu0 %vm313_vm2, %v7423_v44  ;;  %v7453_v54 = vsel %vm270_vm1, %v282_v38, %v284_v45  ;;  %v7456_v55 = vsel %vm228_vm3, %v245_v40, %v247_v46  ;;  %v289_v56 = vrot.slane %v7378_v30, 3  ;;  %v252_v58 = vrot.slane %v7438_v51, 2  ;;  %9172 = vst [vmem:[#allocation14_spill] sm:$0xff] %v7476_v4  ;;  %v7500_v19 = vld [vmem:[%s7310_s3 + $0xb8] sm:$0x3f]  ;;  %v7511_v37 = vld [vmem:[%s7310_s3 + $0xc8] sm:$0xff] }
  0x27   : > { %6089 = vmatprep.mubr.msk.f32.mxu1 %vm313_vm2, %v7430_v47  ;;  %6167 = vmatprep.mubr.msk.f32.mxu0 %vm313_vm2, %v7433_v48  ;;  %v7462_v57 = vsel %vm270_vm1, %v286_v49, %v287_v50  ;;  %v291_v59 = vrot.slane %v7411_v41, 3  ;;  %v292_v60 = vrot.slane %v7414_v42, 3  ;;  %v7468_v61 = vsel %vm228_vm3, %v249_v52, %v250_v53  ;;  %9173 = vst [vmem:[#allocation15_spill] sm:$0xff] %v7508_v34  ;;  %v7535_v52 = vld [vmem:[%s7310_s3 + $0xd0] sm:$0x3f] }
  0x28   : > { %v680_v62 = vrot.slane %v7326_v7, 4  ;;  %v681_v63 = vrot.slane %v7332_v10, 4  ;;  %v7485_v8 = vsel %vm270_vm1, %v287_v50, %v289_v56  ;;  %v294_v9 = vrot.slane %v7438_v51, 3  ;;  %9174 = vst [vmem:[#allocation16_spill] sm:$0xff] %v7511_v37  ;;  %v7676_v7 = vld [vmem:[%s7310_s3 + $0x100] sm:$0x3f] }
  0x29   : > { %v683_v11 = vrot.slane %v7341_v15, 4  ;;  %v7492_v13 = vsel %vm228_vm3, %v250_v53, %v252_v58  ;;  %v7495_v14 = vsel %vm270_vm1, %v291_v59, %v292_v60  ;;  %v296_v16 = vrot.slane %v7473_v0, 3  ;;  %v7543_v59 = vld [vmem:[%s7310_s3 + $0xd8] sm:$0xff] }
  0x2a   : > { %6090 = vmatmul.mubr.msk.f32.gmra.mrb[4].mxu1 %vm313_vm2, %v7453_v54  ;;  %6168 = vmatmul.mubr.msk.f32.gmra.mrb[4].mxu0 %vm313_vm2, %v7456_v55  ;;  %v297_v17 = vrot.slane %v7476_v4, 3  ;;  %v7503_v22 = vsel %vm346_vm0, %v680_v62, %v681_v63  ;;  %v685_v27 = vrot.slane %v7350_v20, 4  ;;  %v686_v32 = vrot.slane %v7353_v21, 4  ;;  %9175 = vst [vmem:[#allocation17_spill] sm:$0xff] %v7543_v59  ;;  %v7553_v62 = vld [vmem:[%s9101_s1 + $0x1c] sm:$0xf] }
  0x2b   : > { %6092 = vmatprep.mubr.msk.f32.mxu1 %vm313_vm2, %v7462_v57  ;;  %6170 = vmatprep.mubr.msk.f32.mxu0 %vm313_vm2, %v7468_v61  ;;  %v7520_v38 = vsel %vm270_vm1, %v292_v60, %v294_v9  ;;  %v7523_v39 = vsel %vm346_vm0, %v681_v63, %v683_v11  ;;  %v299_v40 = vrot.slane %v7500_v19, 3  ;;  %v688_v46 = vrot.slane %v7357_v23, 4  ;;  %v7546_v60 = vld [vmem:[%s7310_s3 + $0xe0] sm:$0xff] }
  0x2c   : > { %v7529_v45 = vsel %vm270_vm1, %v296_v16, %v297_v17  ;;  %v301_v49 = vrot.slane %v7508_v34, 3  ;;  %v302_v50 = vrot.slane %v7511_v37, 3  ;;  %v7538_v53 = vsel %vm346_vm0, %v685_v27, %v686_v32  ;;  %9176 = vst [vmem:[#allocation18_spill] sm:$0xff] %v7546_v60 }
  0x2d   : > { %v690_v56 = vrot.slane %v7372_v28, 4  ;;  %v691_v58 = vrot.slane %v7375_v29, 4  ;;  %v7560_v63 = vsel %vm270_vm1, %v297_v17, %v299_v40  ;;  %v304_v9 = vrot.slane %v7535_v52, 3  ;;  %v7577_v40 = vld [vmem:[%s7310_s3 + $0xe8] sm:$0x3f] }
  0x2e   : > { %6093 = vmatmul.mubr.msk.f32.gmra.mrb[6].mxu1 %vm313_vm2, %v7485_v8  ;;  %6171 = vmatmul.mubr.msk.f32.gmra.mrb[6].mxu0 %vm313_vm2, %v7492_v13  ;;  %9177 = vst [vmem:[#allocation19_spill] sm:$0xff] %v7560_v63  ;;  %v693_v11 = vrot.slane %v7378_v30, 4  ;;  %v7569_v16 = vsel %vm346_vm0, %v686_v32, %v688_v46  ;;  %v7572_v27 = vsel %vm270_vm1, %v301_v49, %v302_v50  ;;  %v306_v29 = vrot.slane %v7543_v59, 3 }
  0x2f   : > { %6095 = vmatprep.mubr.msk.f32.mxu1 %vm313_vm2, %v7495_v14  ;;  %6213 = vmatprep.mubr.msk.f32.mxu0 %vm313_vm2, %v7503_v22  ;;  %9178 = vst [vmem:[#allocation20_spill] sm:$0xff] %v7572_v27  ;;  %v307_v17 = vrot.slane %v7546_v60, 3  ;;  %9179 = vst [vmem:[#allocation21_spill] sm:$0xff] %v7577_v40  ;;  %v7580_v30 = vsel %vm346_vm0, %v690_v56, %v691_v58  ;;  %v696_v28 = vrot.slane %v7414_v42, 4  ;;  %v309_v49 = vrot.slane %v7577_v40, 3 }
  0x30   : > { %v7593_v32 = vsel %vm270_vm1, %v302_v50, %v304_v9  ;;  %v7596_v46 = vsel %vm346_vm0, %v691_v58, %v693_v11  ;;  %v698_v42 = vrot.slane %v7438_v51, 4  ;;  %v230_v23 = vrot.slane %v7321_v6, 2 }
  0x31   : > { %9180 = vst [vmem:[#allocation22_spill] sm:$0xff] %v7593_v32  ;;  %v7602_v56 = vsel %vm270_vm1, %v306_v29, %v307_v17  ;;  %v700_v58 = vrot.slane %v7473_v0, 4  ;;  %v701_v9 = vrot.slane %v7476_v4, 4  ;;  %v7619_v29 = vsel %vm270_vm1, %v307_v17, %v309_v49 }
  0x32   : > { %6096 = vmatmul.mubr.msk.f32.gmra.mrb[8].mxu1 %vm313_vm2, %v7520_v38  ;;  %6214 = vmatmul.mubr.msk.f32.vlgmr.msra.gmra.mrb[0].mxu0 %vm313_vm2, %v7523_v39  ;;  %9181 = vst [vmem:[#allocation23_spill] sm:$0xff] %v7602_v56  ;;  %9182 = vst [vmem:[#allocation24_spill] sm:$0xff] %v7619_v29  ;;  %v232_v11 = vrot.slane %v7336_v12, 2  ;;  %v703_v21 = vrot.slane %v7500_v19, 4  ;;  %v705_v17 = vrot.slane %v7508_v34, 4  ;;  %v706_v49 = vrot.slane %v7511_v37, 4 }
  0x33   : > { %6098 = vmatprep.mubr.msk.f32.mxu1 %vm313_vm2, %v7529_v45  ;;  %6238 = vmatpush3.msk.msra.mxu0 %vm346_vm0, %v7395_v35  ;;  %v695_v35 = vrot.slane %v7411_v41, 4  ;;  %v229_v41 = vrot.slane %v7318_v5, 2  ;;  %v7630_v20 = vsel %vm346_vm0, %v700_v58, %v701_v9  ;;  %v710_v15 = vrot.slane %v7543_v59, 4 }
  0x34   : > { %6216 = vmatprep.mubr.msk.f32.mxu0 %vm313_vm2, %v7538_v53  ;;  %6263 = vmatprep.subr.msk.mxu0 %vm346_vm0, %v7553_v62  ;;  %v7647_v58 = vsel %vm346_vm0, %v705_v17, %v706_v49  ;;  %v711_v10 = vrot.slane %v7546_v60, 4 }
  0x35   : > { %v7608_v50 = vsel %vm346_vm0, %v695_v35, %v696_v28  ;;  %v7625_v35 = vsel %vm346_vm0, %v696_v28, %v698_v42  ;;  %v231_v51 = vsel %vm228_vm3, %v229_v41, %v230_v23  ;;  %v233_v28 = vsel %vm228_vm3, %v230_v23, %v232_v11  ;;  %v7656_v23 = vld [vmem:[%s7310_s3 + $0xf8] sm:$0xff] }
  0x36   : > { %6099 = vmatmul.mubr.msk.f32.gmra.mrb[10].mxu1 %vm313_vm2, %v7560_v63  ;;  %6217 = vmatmul.mubr.msk.f32.gmra.mrb[2].mxu0 %vm313_vm2, %v7569_v16  ;;  %v7643_v41 = vsel %vm346_vm0, %v701_v9, %v703_v21  ;;  %v708_v42 = vrot.slane %v7535_v52, 4  ;;  %v713_v9 = vrot.slane %v7577_v40, 4  ;;  %v7671_v11 = vsel %vm346_vm0, %v710_v15, %v711_v10 }
  0x37   : > { %6101 = vmatprep.mubr.msk.f32.mxu1 %vm313_vm2, %v7572_v27  ;;  %6219 = vmatprep.mubr.msk.f32.mxu0 %vm313_vm2, %v7580_v30 }
  0x38   : > { %v7667_v21 = vsel %vm346_vm0, %v706_v49, %v708_v42  ;;  %v7689_v15 = vsel %vm346_vm0, %v711_v10, %v713_v9  ;;  %v255_v42 = vrot.slane %v7476_v4, 2  ;;  %v257_v9 = vrot.slane %v7500_v19, 2  ;;  %v7727_v4 = vld [vmem:[%s9101_s1 + $0x20] sm:$0xf] }
  0x3a   : > { %6102 = vmatmul.mubr.msk.f32.gmra.mrb[12].mxu1 %vm313_vm2, %v7593_v32  ;;  %6220 = vmatmul.mubr.msk.f32.gmra.mrb[4].mxu0 %vm313_vm2, %v7596_v46 }
  0x3b   : > { %6104 = vmatprep.mubr.msk.f32.mxu1 %vm313_vm2, %v7602_v56  ;;  %6222 = vmatprep.mubr.msk.f32.mxu0 %vm313_vm2, %v7608_v50 }
  0x3e   : > { %6105 = vmatmul.mubr.msk.f32.gmra.mrb[14].mxu1 %vm313_vm2, %v7619_v29  ;;  %6223 = vmatmul.mubr.msk.f32.gmra.mrb[6].mxu0 %vm313_vm2, %v7625_v35 }
  0x3f   : > { %6109 = vmatprep.mubr.msk.f32.mxu1 %vm313_vm2, %v231_v51  ;;  %6225 = vmatprep.mubr.msk.f32.mxu0 %vm313_vm2, %v7630_v20  ;;  %v7653_v51 = vld [vmem:[%s7310_s3 + $0xf0] sm:$0xff] }
  0x40   : > { %v1266_v17 = vrot.slane %v7653_v51, 4 }
  0x42   : > { %6110 = vmatmul.mubr.msk.f32.vlgmr.msra.gmra.mrb[0].mxu1 %vm313_vm2, %v233_v28  ;;  %6226 = vmatmul.mubr.msk.f32.gmra.mrb[8].mxu0 %vm313_vm2, %v7643_v41  ;;  %v1267_v28 = vrot.slane %v7656_v23, 4 }
  0x43   : > { %6134 = vmatpush3.msk.msra.mxu1 %vm346_vm0, %v7400_v36  ;;  %6112 = vmatprep.mubr.msk.f32.mxu1 %vm313_vm2, %v7362_v24  ;;  %v1269_v24 = vrot.slane %v7676_v7, 4 }
  0x44   : > { %6228 = vmatprep.mubr.msk.f32.mxu0 %vm313_vm2, %v7647_v58  ;;  %6731 = vmatprep.subr.msk.mxu1 %vm346_vm0, %v7296_v2  ;;  %v7693_v49 = vsel %vm346_vm0, %v1266_v17, %v1267_v28 }
  0x45   : > { %v7704_v10 = vsel %vm346_vm0, %v1267_v28, %v1269_v24  ;;  %v259_v28 = vrot.slane %v7508_v34, 2  ;;  %v260_v24 = vrot.slane %v7511_v37, 2  ;;  %v264_v34 = vrot.slane %v7543_v59, 2 }
  0x46   : > { %6113 = vmatmul.mubr.msk.f32.gmra.mrb[2].mxu1 %vm313_vm2, %v7385_v31  ;;  %6229 = vmatmul.mubr.msk.f32.gmra.mrb[10].mxu0 %vm313_vm2, %v7667_v21  ;;  %v254_v31 = vrot.slane %v7473_v0, 2 }
  0x47   : > { %6115 = vmatprep.mubr.msk.f32.mxu1 %vm313_vm2, %v7420_v43  ;;  %6231 = vmatprep.mubr.msk.f32.mxu0 %vm313_vm2, %v7671_v11  ;;  %v7742_v37 = vsel %vm228_vm3, %v259_v28, %v260_v24  ;;  %v676_v28 = vrot.slane %v7321_v6, 4 }
  0x48   : > { %v7718_v17 = vsel %vm228_vm3, %v254_v31, %v255_v42  ;;  %v262_v31 = vrot.slane %v7535_v52, 2 }
  0x4a   : > { %6116 = vmatmul.mubr.msk.f32.gmra.mrb[4].mxu1 %vm313_vm2, %v7423_v44  ;;  %6232 = vmatmul.mubr.msk.f32.gmra.mrb[12].mxu0 %vm313_vm2, %v7689_v15 }
  0x4b   : > { %6118 = vmatprep.mubr.msk.f32.mxu1 %vm313_vm2, %v7433_v48  ;;  %6234 = vmatprep.mubr.msk.f32.mxu0 %vm313_vm2, %v7693_v49 }
  0x4e   : > { %6119 = vmatmul.mubr.msk.f32.gmra.mrb[6].mxu1 %vm313_vm2, %v7456_v55  ;;  %6235 = vmatmul.mubr.msk.f32.gmra.mrb[14].mxu0 %vm313_vm2, %v7704_v10 }
  0x4f   : > { %6121 = vmatprep.mubr.msk.f32.mxu1 %vm313_vm2, %v7468_v61  ;;  %6239 = vmatprep.mubr.msk.f32.mxu0 %vm313_vm2, %v7420_v43  ;;  %v7734_v43 = vsel %vm228_vm3, %v255_v42, %v257_v9  ;;  %v675_v9 = vrot.slane %v7318_v5, 4 }
  0x52   : > { %6122 = vmatmul.mubr.msk.f32.gmra.mrb[8].mxu1 %vm313_vm2, %v7492_v13  ;;  %6240 = vmatmul.mubr.msk.f32.vlgmr.msra.gmra.mrb[0].mxu0 %vm313_vm2, %v7423_v44  ;;  %v265_v44 = vrot.slane %v7546_v60, 2 }
  0x53   : > { %6124 = vmatprep.mubr.msk.f32.mxu1 %vm313_vm2, %v7718_v17  ;;  %6264 = vmatpush3.msk.msra.mxu0 %vm346_vm0, %v7553_v62  ;;  %v267_v62 = vrot.slane %v7577_v40, 2  ;;  %v7813_v40 = vld [vmem:[%s7310_s3 + $0x118] sm:$0x3f] }
  0x54   : > { %6242 = vmatprep.mubr.msk.f32.mxu0 %vm313_vm2, %v7433_v48  ;;  %6289 = vmatprep.subr.msk.mxu0 %vm346_vm0, %v7727_v4  ;;  %v7755_v48 = vsel %vm228_vm3, %v260_v24, %v262_v31  ;;  %v7761_v42 = vsel %vm228_vm3, %v264_v34, %v265_v44  ;;  %v677_v34 = vsel %vm346_vm0, %v675_v9, %v676_v28  ;;  %v916_v24 = vrot.slane %v7653_v51, 2  ;;  %v5292_v9 = vld [vmem:[%s9101_s1 + $0x10] sm:$0xf] }
  0x55   : > { %v917_v31 = vrot.slane %v7656_v23, 2 }
  0x56   : > { %6125 = vmatmul.mubr.msk.f32.gmra.mrb[10].mxu1 %vm313_vm2, %v7734_v43  ;;  %6243 = vmatmul.mubr.msk.f32.gmra.mrb[2].mxu0 %vm313_vm2, %v7456_v55  ;;  %v7772_v55 = vsel %vm228_vm3, %v265_v44, %v267_v62  ;;  %v7790_v44 = vld [vmem:[%s7310_s3 + $0x108] sm:$0xff]  ;;  %v7793_v62 = vld [vmem:[%s7310_s3 + $0x110] sm:$0xff] }
  0x57   : > { %6127 = vmatprep.mubr.msk.f32.mxu1 %vm313_vm2, %v7742_v37  ;;  %6245 = vmatprep.mubr.msk.f32.mxu0 %vm313_vm2, %v7468_v61  ;;  %v678_v61 = vrot.slane %v7336_v12, 4 }
  0x5a   : > { %6128 = vmatmul.mubr.msk.f32.gmra.mrb[12].mxu1 %vm313_vm2, %v7755_v48  ;;  %6246 = vmatmul.mubr.msk.f32.gmra.mrb[4].mxu0 %vm313_vm2, %v7492_v13  ;;  %v679_v13 = vsel %vm346_vm0, %v676_v28, %v678_v61  ;;  %v919_v28 = vrot.slane %v7676_v7, 2  ;;  %v7808_v61 = vsel %vm228_vm3, %v916_v24, %v917_v31  ;;  %v1447_v24 = vrot.slane %v7813_v40, 2 }
  0x5b   : > { %6130 = vmatprep.mubr.msk.f32.mxu1 %vm313_vm2, %v7761_v42  ;;  %6248 = vmatprep.mubr.msk.f32.mxu0 %vm313_vm2, %v7718_v17 }
  0x5e   : > { %6131 = vmatmul.mubr.msk.f32.gmra.mrb[14].mxu1 %vm313_vm2, %v7772_v55  ;;  %6249 = vmatmul.mubr.msk.f32.gmra.mrb[6].mxu0 %vm313_vm2, %v7734_v43 }
  0x5f   : > { %6135 = vmatprep.mubr.msk.f32.mxu1 %vm313_vm2, %v677_v34  ;;  %6251 = vmatprep.mubr.msk.f32.mxu0 %vm313_vm2, %v7742_v37  ;;  %v1444_v34 = vrot.slane %v7790_v44, 2 }
  0x62   : > { %6136 = vmatmul.mubr.msk.f32.vlgmr.msra.gmra.mrb[0].mxu1 %vm313_vm2, %v679_v13  ;;  %6252 = vmatmul.mubr.msk.f32.gmra.mrb[8].mxu0 %vm313_vm2, %v7755_v48  ;;  %v1445_v13 = vrot.slane %v7793_v62, 2 }
  0x63   : > { %6732 = vmatpush3.msk.msra.mxu1 %vm346_vm0, %v7296_v2  ;;  %6138 = vmatprep.mubr.msk.f32.mxu1 %vm313_vm2, %v7503_v22  ;;  %v7825_v22 = vsel %vm228_vm3, %v917_v31, %v919_v28  ;;  %v7843_v31 = vld [vmem:[%s7310_s3] sm:$0xff]  ;;  %v7846_v28 = vld [vmem:[%s7310_s3 + $0x8] sm:$0xff] }
  0x64   : > { %6254 = vmatprep.mubr.msk.f32.mxu0 %vm313_vm2, %v7761_v42  ;;  %6185 = vmatprep.subr.msk.mxu1 %vm346_vm0, %v5292_v9  ;;  %v1446_v60 = vsel %vm228_vm3, %v1444_v34, %v1445_v13  ;;  %v7849_v34 = vld [vmem:[%s7310_s3 + $0x10] sm:$0x3f] }
  0x66   : > { %6139 = vmatmul.mubr.msk.f32.gmra.mrb[2].mxu1 %vm313_vm2, %v7523_v39  ;;  %6255 = vmatmul.mubr.msk.f32.gmra.mrb[10].mxu0 %vm313_vm2, %v7772_v55  ;;  %v1448_v39 = vsel %vm228_vm3, %v1445_v13, %v1447_v24  ;;  %v3935_v13 = vrot.slane %v7846_v28, 6  ;;  %v3937_v24 = vrot.slane %v7849_v34, 6 }
  0x67   : > { %6141 = vmatprep.mubr.msk.f32.mxu1 %vm313_vm2, %v7538_v53  ;;  %6257 = vmatprep.mubr.msk.f32.mxu0 %vm313_vm2, %v7808_v61 }
  0x68   : > { %v7862_v59 = vsel %vm3933_vm4, %v3935_v13, %v3937_v24  ;;  %v1619_v24 = vrot.slane %v7790_v44, 3 }
  0x6a   : > { %6142 = vmatmul.mubr.msk.f32.gmra.mrb[4].mxu1 %vm313_vm2, %v7569_v16  ;;  %6258 = vmatmul.mubr.msk.f32.gmra.mrb[12].mxu0 %vm313_vm2, %v7825_v22 }
  0x6b   : > { %6144 = vmatprep.mubr.msk.f32.mxu1 %vm313_vm2, %v7580_v30  ;;  %6260 = vmatprep.mubr.msk.f32.mxu0 %vm313_vm2, %v1446_v60  ;;  %v3934_v60 = vrot.slane %v7843_v31, 6 }
  0x6e   : > { %6145 = vmatmul.mubr.msk.f32.gmra.mrb[6].mxu1 %vm313_vm2, %v7596_v46  ;;  %6261 = vmatmul.mubr.msk.f32.gmra.mrb[14].mxu0 %vm313_vm2, %v1448_v39  ;;  %v7859_v39 = vsel %vm3933_vm4, %v3934_v60, %v3935_v13  ;;  %v1092_v60 = vrot.slane %v7656_v23, 3 }
  0x6f   : > { %6147 = vmatprep.mubr.msk.f32.mxu1 %vm313_vm2, %v7608_v50  ;;  %6265 = vmatprep.mubr.msk.f32.mxu0 %vm313_vm2, %v7430_v47 }
  0x72   : > { %6148 = vmatmul.mubr.msk.f32.gmra.mrb[8].mxu1 %vm313_vm2, %v7625_v35  ;;  %6266 = vmatmul.mubr.msk.f32.vlgmr.msra.gmra.mrb[0].mxu0 %vm313_vm2, %v7453_v54 }
  0x73   : > { %6150 = vmatprep.mubr.msk.f32.mxu1 %vm313_vm2, %v7630_v20  ;;  %6290 = vmatpush3.msk.msra.mxu0 %vm346_vm0, %v7727_v4  ;;  %v1091_v4 = vrot.slane %v7653_v51, 3 }
  0x74   : > { %6268 = vmatprep.mubr.msk.f32.mxu0 %vm313_vm2, %v7462_v57  ;;  %6523 = vmatprep.subr.msk.mxu0 %vm346_vm0, %v7291_v1 }
  0x75   : > { %v7911_v13 = vsel %vm270_vm1, %v1091_v4, %v1092_v60 }
  0x76   : > { %6151 = vmatmul.mubr.msk.f32.gmra.mrb[10].mxu1 %vm313_vm2, %v7643_v41  ;;  %6269 = vmatmul.mubr.msk.f32.gmra.mrb[2].mxu0 %vm313_vm2, %v7485_v8  ;;  %9183 = vst [vmem:[#allocation25_spill] sm:$0xff] %v7911_v13 }
  0x77   : > { %6153 = vmatprep.mubr.msk.f32.mxu1 %vm313_vm2, %v7647_v58  ;;  %6271 = vmatprep.mubr.msk.f32.mxu0 %vm313_vm2, %v7495_v14 }
  0x7a   : > { %6154 = vmatmul.mubr.msk.f32.gmra.mrb[12].mxu1 %vm313_vm2, %v7667_v21  ;;  %6272 = vmatmul.mubr.msk.f32.gmra.mrb[4].mxu0 %vm313_vm2, %v7520_v38 }
  0x7b   : > { %6156 = vmatprep.mubr.msk.f32.mxu1 %vm313_vm2, %v7671_v11  ;;  %6274 = vmatprep.mubr.msk.f32.mxu0 %vm313_vm2, %v7529_v45 }
  0x7e   : > { %6157 = vmatmul.mubr.msk.f32.gmra.mrb[14].mxu1 %vm313_vm2, %v7689_v15  ;;  %6275 = vmatmul.mubr.msk.f32.gmra.mrb[6].mxu0 %vm313_vm2, %v7560_v63 }
  0x7f   : > { %6173 = vmatprep.mubr.msk.f32.mxu1 %vm313_vm2, %v7718_v17  ;;  %6277 = vmatprep.mubr.msk.f32.mxu0 %vm313_vm2, %v7572_v27  ;;  %v1094_v17 = vrot.slane %v7676_v7, 3 }
  0x82   : > { %6174 = vmatmul.mubr.msk.f32.vlgmr.msra.gmra.mrb[8].mxu1 %vm313_vm2, %v7734_v43  ;;  %6278 = vmatmul.mubr.msk.f32.gmra.mrb[8].mxu0 %vm313_vm2, %v7593_v32  ;;  %v1620_v43 = vrot.slane %v7793_v62, 3 }
  0x83   : > { %6186 = vmatpush3.msk.msra.mxu1 %vm346_vm0, %v5292_v9  ;;  %6176 = vmatprep.mubr.msk.f32.mxu1 %vm313_vm2, %v7742_v37  ;;  %v7926_v37 = vsel %vm270_vm1, %v1092_v60, %v1094_v17  ;;  %v1622_v9 = vrot.slane %v7813_v40, 3 }
  0x84   : > { %6280 = vmatprep.mubr.msk.f32.mxu0 %vm313_vm2, %v7602_v56  ;;  %6315 = vmatprep.subr.msk.mxu1 %vm346_vm0, %v7291_v1  ;;  %9184 = vst [vmem:[#allocation26_spill] sm:$0xff] %v7926_v37  ;;  %v7930_v4 = vsel %vm270_vm1, %v1619_v24, %v1620_v43 }
  0x85   : > { %9185 = vst [vmem:[#allocation27_spill] sm:$0xff] %v7930_v4 }
  0x86   : > { %6177 = vmatmul.mubr.msk.f32.gmra.mrb[10].mxu1 %vm313_vm2, %v7755_v48  ;;  %6281 = vmatmul.mubr.msk.f32.gmra.mrb[10].mxu0 %vm313_vm2, %v7619_v29  ;;  %v7941_v48 = vsel %vm270_vm1, %v1620_v43, %v1622_v9  ;;  %v9189_v43 = vld [vmem:[#allocation4_spill] sm:$0xff] }
  0x87   : > { %6179 = vmatprep.mubr.msk.f32.mxu1 %vm313_vm2, %v7761_v42  ;;  %6283 = vmatprep.mubr.msk.f32.mxu0 %vm313_vm2, %v7911_v13  ;;  %9186 = vst [vmem:[#allocation28_spill] sm:$0xff] %v7941_v48  ;;  %v3605_v42 = vrot.slane %v7849_v34, 3  ;;  %v9188_v34 = vld [vmem:[#allocation3_spill] sm:$0xff]  ;;  %v2044_v9 = vrot.slane %v9189_v43, 1 }
  0x88   : > { %v2042_v60 = vrot.slane %v9188_v34, 1 }
  0x8a   : > { %6180 = vmatmul.mubr.msk.f32.gmra.mrb[12].mxu1 %vm313_vm2, %v7772_v55  ;;  %6284 = vmatmul.mubr.msk.f32.gmra.mrb[12].mxu0 %vm313_vm2, %v7926_v37 }
  0x8b   : > { %6182 = vmatprep.mubr.msk.f32.mxu1 %vm313_vm2, %v7808_v61  ;;  %6286 = vmatprep.mubr.msk.f32.mxu0 %vm313_vm2, %v7930_v4  ;;  %v9187_v61 = vld [vmem:[#allocation2_spill] sm:$0xff] }
  0x8c   : > { %v2413_v4 = vrot.slane %v9187_v61, 5 }
  0x8e   : > { %6183 = vmatmul.mubr.msk.f32.gmra.mrb[14].mxu1 %vm313_vm2, %v7825_v22  ;;  %6287 = vmatmul.mubr.msk.f32.gmra.mrb[14].mxu0 %vm313_vm2, %v7941_v48  ;;  %v2041_v22 = vrot.slane %v9187_v61, 1 }
  0x8f   : > { %6187 = vmatprep.mubr.msk.f32.mxu1 %vm313_vm2, %v7368_v26  ;;  %6291 = vmatprep.mubr.msk.f32.mxu0 %vm313_vm2, %v7538_v53  ;;  %v8005_v53 = vld [vmem:[%s7310_s3 + $0x20] sm:$0xff] }
  0x90   : > { %v3940_v48 = vrot.slane %v8005_v53, 6 }
  0x92   : > { %6188 = vmatmul.mubr.msk.f32.vlgmr.msra.gmra.mrb[16].mxu1 %vm313_vm2, %v7389_v33  ;;  %6292 = vmatmul.mubr.msk.f32.vlgmr.msra.gmra.mrb[0].mxu0 %vm313_vm2, %v7569_v16  ;;  %v1797_v16 = vrot.slane %v7813_v40, 4 }
  0x93   : > { %6316 = vmatpush3.msk.msra.mxu1 %vm346_vm0, %v7291_v1  ;;  %6524 = vmatpush3.msk.msra.mxu0 %vm346_vm0, %v7291_v1  ;;  %v1794_v1 = vrot.slane %v7790_v44, 4 }
  0x94   : > { %6190 = vmatprep.mubr.msk.f32.mxu1 %vm313_vm2, %v7430_v47  ;;  %6294 = vmatprep.mubr.msk.f32.mxu0 %vm313_vm2, %v7580_v30  ;;  %v8002_v30 = vld [vmem:[%s7310_s3 + $0x18] sm:$0xff] }
  0x95   : > { %6341 = vmatprep.subr.msk.mxu1 %vm346_vm0, %v7306_v3  ;;  %6549 = vmatprep.subr.msk.mxu0 %vm346_vm0, %v7306_v3 }
  0x96   : > { %6191 = vmatmul.mubr.msk.f32.gmra.mrb[18].mxu1 %vm313_vm2, %v7453_v54  ;;  %6295 = vmatmul.mubr.msk.f32.gmra.mrb[2].mxu0 %vm313_vm2, %v7596_v46  ;;  %v2071_v46 = vrot.slane %v8002_v30, 3 }
  0x97   : > { %6193 = vmatprep.mubr.msk.f32.mxu1 %vm313_vm2, %v7462_v57  ;;  %6297 = vmatprep.mubr.msk.f32.mxu0 %vm313_vm2, %v7608_v50  ;;  %v2072_v50 = vrot.slane %v8005_v53, 3 }
  0x9a   : > { %6194 = vmatmul.mubr.msk.f32.gmra.mrb[20].mxu1 %vm313_vm2, %v7485_v8  ;;  %6298 = vmatmul.mubr.msk.f32.gmra.mrb[4].mxu0 %vm313_vm2, %v7625_v35  ;;  %v8019_v35 = vld [vmem:[%s7310_s3 + $0x28] sm:$0x3f] }
  0x9b   : > { %6196 = vmatprep.mubr.msk.f32.mxu1 %vm313_vm2, %v7495_v14  ;;  %6300 = vmatprep.mubr.msk.f32.mxu0 %vm313_vm2, %v7630_v20  ;;  %v1795_v20 = vrot.slane %v7793_v62, 4  ;;  %v2039_v62 = vrot.slane %v7336_v12, 1 }
  0x9e   : > { %6197 = vmatmul.mubr.msk.f32.gmra.mrb[22].mxu1 %vm313_vm2, %v7520_v38  ;;  %6301 = vmatmul.mubr.msk.f32.gmra.mrb[6].mxu0 %vm313_vm2, %v7643_v41  ;;  %v1796_v41 = vsel %vm346_vm0, %v1794_v1, %v1795_v20  ;;  %v9190_v1 = vld [vmem:[#allocation5_spill] sm:$0xff] }
  0x9f   : > { %6199 = vmatprep.mubr.msk.f32.mxu1 %vm313_vm2, %v7529_v45  ;;  %6303 = vmatprep.mubr.msk.f32.mxu0 %vm313_vm2, %v7647_v58  ;;  %v3602_v58 = vrot.slane %v7843_v31, 3 }
  0xa2   : > { %6200 = vmatmul.mubr.msk.f32.gmra.mrb[24].mxu1 %vm313_vm2, %v7560_v63  ;;  %6304 = vmatmul.mubr.msk.f32.gmra.mrb[8].mxu0 %vm313_vm2, %v7667_v21  ;;  %v3603_v21 = vrot.slane %v7846_v28, 3 }
  0xa3   : > { %6202 = vmatprep.mubr.msk.f32.mxu1 %vm313_vm2, %v7572_v27  ;;  %6306 = vmatprep.mubr.msk.f32.mxu0 %vm313_vm2, %v7671_v11  ;;  %v2074_v11 = vrot.slane %v8019_v35, 3 }
  0xa4   : > { %v3604_v55 = vsel %vm270_vm1, %v3602_v58, %v3603_v21  ;;  %v3606_v44 = vsel %vm270_vm1, %v3603_v21, %v3605_v42  ;;  %v9193_v58 = vld [vmem:[#allocation8_spill] sm:$0xff] }
  0xa5   : > { %v2051_v21 = vrot.slane %v9193_v58, 1 }
  0xa6   : > { %6203 = vmatmul.mubr.msk.f32.gmra.mrb[26].mxu1 %vm313_vm2, %v7593_v32  ;;  %6307 = vmatmul.mubr.msk.f32.gmra.mrb[10].mxu0 %vm313_vm2, %v7689_v15  ;;  %v1798_v15 = vsel %vm346_vm0, %v1795_v20, %v1797_v16  ;;  %v2046_v20 = vrot.slane %v9190_v1, 1  ;;  %v9191_v16 = vld [vmem:[#allocation6_spill] sm:$0xff] }
  0xa7   : > { %6205 = vmatprep.mubr.msk.f32.mxu1 %vm313_vm2, %v7602_v56  ;;  %6309 = vmatprep.mubr.msk.f32.mxu0 %vm313_vm2, %v7693_v49  ;;  %v2073_v49 = vsel %vm270_vm1, %v2071_v46, %v2072_v50  ;;  %v2047_v46 = vrot.slane %v9191_v16, 1  ;;  %v7172_v56 = vld [vmem:[%s7310_s3 + $0xa0] sm:$0x3f] }
  0xaa   : > { %6206 = vmatmul.mubr.msk.f32.gmra.mrb[28].mxu1 %vm313_vm2, %v7619_v29  ;;  %6310 = vmatmul.mubr.msk.f32.gmra.mrb[12].mxu0 %vm313_vm2, %v7704_v10  ;;  %v2075_v10 = vsel %vm270_vm1, %v2072_v50, %v2074_v11 }
  0xab   : > { %6208 = vmatprep.mubr.msk.f32.mxu1 %vm313_vm2, %v7911_v13  ;;  %6312 = vmatprep.mubr.msk.f32.mxu0 %vm313_vm2, %v1796_v41  ;;  %v8154_v41 = vsel %vm2030_vm5, %v2046_v20, %v2047_v46  ;;  %v3945_v13 = vrot.slane %v7321_v6, 6 }
  0xae   : > { %6209 = vmatmul.mubr.msk.f32.gmra.mrb[30].mxu1 %vm313_vm2, %v7926_v37  ;;  %6313 = vmatmul.mubr.msk.f32.gmra.mrb[14].mxu0 %vm313_vm2, %v1798_v15  ;;  %v3944_v37 = vrot.slane %v7318_v5, 6 }
  0xaf   : > { %6317 = vmatprep.mubr.msk.f32.mxu1 %vm313_vm2, %v2073_v49  ;;  %6525 = vmatprep.mubr.msk.f32.mxu0 %vm313_vm2, %v3604_v55 }
  0xb2   : > { %6318 = vmatmul.mubr.msk.f32.vlgmr.msra.gmra.mrb[32].mxu1 %vm313_vm2, %v2075_v10  ;;  %6526 = vmatmul.mubr.msk.f32.vlgmr.msra.gmra.mrb[16].mxu0 %vm313_vm2, %v3606_v44 }
  0xb3   : > { %6342 = vmatpush3.msk.msra.mxu1 %vm346_vm0, %v7306_v3  ;;  %6550 = vmatpush3.msk.msra.mxu0 %vm346_vm0, %v7306_v3  ;;  %v2031_v3 = vrot.slane %v8002_v30, 1 }
  0xb4   : > { %6320 = vmatprep.mubr.msk.f32.mxu1 %vm313_vm2, %v7346_v18  ;;  %6528 = vmatprep.mubr.msk.f32.mxu0 %vm313_vm2, %v2073_v49  ;;  %v9195_v49 = vld [vmem:[#allocation10_spill] sm:$0xff] }
  0xb5   : > { %6367 = vmatprep.subr.msk.mxu1 %vm346_vm0, %v7400_v36  ;;  %6575 = vmatprep.subr.msk.mxu0 %vm346_vm0, %v7400_v36  ;;  %v2054_v42 = vrot.slane %v9195_v49, 1 }
  0xb6   : > { %6321 = vmatmul.mubr.msk.f32.gmra.mrb[34].mxu1 %vm313_vm2, %v7365_v25  ;;  %6529 = vmatmul.mubr.msk.f32.gmra.mrb[18].mxu0 %vm313_vm2, %v2075_v10  ;;  %v9196_v10 = vld [vmem:[#allocation11_spill] sm:$0xff] }
  0xb7   : > { %6323 = vmatprep.mubr.msk.f32.mxu1 %vm313_vm2, %v7368_v26  ;;  %6531 = vmatprep.mubr.msk.f32.mxu0 %vm313_vm2, %v7346_v18  ;;  %v2032_v18 = vrot.slane %v8005_v53, 1  ;;  %v2056_v44 = vrot.slane %v9196_v10, 1 }
  0xba   : > { %6324 = vmatmul.mubr.msk.f32.gmra.mrb[36].mxu1 %vm313_vm2, %v7389_v33  ;;  %6532 = vmatmul.mubr.msk.f32.gmra.mrb[20].mxu0 %vm313_vm2, %v7365_v25  ;;  %v2034_v25 = vrot.slane %v8019_v35, 1 }
  0xbb   : > { %6326 = vmatprep.mubr.msk.f32.mxu1 %vm313_vm2, %v7430_v47  ;;  %6534 = vmatprep.mubr.msk.f32.mxu0 %vm313_vm2, %v7368_v26  ;;  %v2033_v26 = vsel %vm2030_vm5, %v2031_v3, %v2032_v18  ;;  %v9197_v3 = vld [vmem:[#allocation12_spill] sm:$0xff] }
  0xbe   : > { %6327 = vmatmul.mubr.msk.f32.gmra.mrb[38].mxu1 %vm313_vm2, %v7453_v54  ;;  %6535 = vmatmul.mubr.msk.f32.gmra.mrb[22].mxu0 %vm313_vm2, %v7389_v33  ;;  %v2036_v33 = vrot.slane %v7318_v5, 1 }
  0xbf   : > { %6329 = vmatprep.mubr.msk.f32.mxu1 %vm313_vm2, %v7462_v57  ;;  %6537 = vmatprep.mubr.msk.f32.mxu0 %vm313_vm2, %v7430_v47  ;;  %v2037_v47 = vrot.slane %v7321_v6, 1 }
  0xc1   : > { %v2038_v17 = vsel %vm2030_vm5, %v2036_v33, %v2037_v47  ;;  %v2040_v24 = vsel %vm2030_vm5, %v2037_v47, %v2039_v62  ;;  %v9199_v62 = vld [vmem:[#allocation14_spill] sm:$0xff] }
  0xc2   : > { %6330 = vmatmul.mubr.msk.f32.gmra.mrb[40].mxu1 %vm313_vm2, %v7485_v8  ;;  %6538 = vmatmul.mubr.msk.f32.gmra.mrb[24].mxu0 %vm313_vm2, %v7453_v54  ;;  %v2035_v54 = vsel %vm2030_vm5, %v2032_v18, %v2034_v25  ;;  %v2057_v18 = vrot.slane %v9197_v3, 1 }
  0xc3   : > { %6332 = vmatprep.mubr.msk.f32.mxu1 %vm313_vm2, %v7495_v14  ;;  %6540 = vmatprep.mubr.msk.f32.mxu0 %vm313_vm2, %v7462_v57 }
  0xc4   : > { %v8188_v47 = vsel %vm2030_vm5, %v2056_v44, %v2057_v18  ;;  %v2404_v44 = vrot.slane %v8005_v53, 5 }
  0xc6   : > { %6333 = vmatmul.mubr.msk.f32.gmra.mrb[42].mxu1 %vm313_vm2, %v7520_v38  ;;  %6541 = vmatmul.mubr.msk.f32.gmra.mrb[26].mxu0 %vm313_vm2, %v7485_v8 }
  0xc7   : > { %6335 = vmatprep.mubr.msk.f32.mxu1 %vm313_vm2, %v7529_v45  ;;  %6543 = vmatprep.mubr.msk.f32.mxu0 %vm313_vm2, %v7495_v14 }
  0xca   : > { %6336 = vmatmul.mubr.msk.f32.gmra.mrb[44].mxu1 %vm313_vm2, %v7560_v63  ;;  %6544 = vmatmul.mubr.msk.f32.gmra.mrb[28].mxu0 %vm313_vm2, %v7520_v38 }
  0xcb   : > { %6338 = vmatprep.mubr.msk.f32.mxu1 %vm313_vm2, %v7572_v27  ;;  %6546 = vmatprep.mubr.msk.f32.mxu0 %vm313_vm2, %v7529_v45 }
  0xce   : > { %6339 = vmatmul.mubr.msk.f32.gmra.mrb[46].mxu1 %vm313_vm2, %v7593_v32  ;;  %6547 = vmatmul.mubr.msk.f32.gmra.mrb[30].mxu0 %vm313_vm2, %v7560_v63  ;;  %v3967_v32 = vrot.slane %v7172_v56, 6 }
  0xcf   : > { %6343 = vmatprep.mubr.msk.f32.mxu1 %vm313_vm2, %v2033_v26  ;;  %6551 = vmatprep.mubr.msk.f32.mxu0 %vm313_vm2, %v7843_v31  ;;  %v8132_v31 = vsel %vm2030_vm5, %v2041_v22, %v2042_v60  ;;  %v9198_v26 = vld [vmem:[#allocation13_spill] sm:$0xff]  ;;  %v2062_v22 = vrot.slane %v9199_v62, 1 }
  0xd0   : > { %v2059_v33 = vrot.slane %v9198_v26, 1 }
  0xd2   : > { %6344 = vmatmul.mubr.msk.f32.vlgmr.msra.gmra.mrb[32].mxu1 %vm313_vm2, %v2035_v54  ;;  %6552 = vmatmul.mubr.msk.f32.vlgmr.msra.gmra.mrb[16].mxu0 %vm313_vm2, %v7846_v28  ;;  %v9192_v28 = vld [vmem:[#allocation7_spill] sm:$0xff]  ;;  %v2061_v54 = vrot.slane %v7473_v0, 1 }
  0xd3   : > { %6368 = vmatpush3.msk.msra.mxu1 %vm346_vm0, %v7400_v36  ;;  %6576 = vmatpush3.msk.msra.mxu0 %vm346_vm0, %v7400_v36  ;;  %v8148_v36 = vsel %vm2030_vm5, %v2042_v60, %v2044_v9  ;;  %v2049_v50 = vrot.slane %v9192_v28, 1  ;;  %v8199_v60 = vsel %vm2030_vm5, %v2057_v18, %v2059_v33  ;;  %v9200_v9 = vld [vmem:[#allocation15_spill] sm:$0xff]  ;;  %v2406_v33 = vrot.slane %v8019_v35, 5 }
  0xd4   : > { %6346 = vmatprep.mubr.msk.f32.mxu1 %vm313_vm2, %v2038_v17  ;;  %6554 = vmatprep.mubr.msk.f32.mxu0 %vm313_vm2, %v8002_v30  ;;  %v2064_v17 = vrot.slane %v7500_v19, 1  ;;  %v2066_v20 = vrot.slane %v9200_v9, 1  ;;  %v2438_v27 = vrot.slane %v9200_v9, 5  ;;  %v2441_v9 = vrot.slane %v7535_v52, 5 }
  0xd5   : > { %6393 = vmatprep.subr.msk.mxu1 %vm346_vm0, %v7296_v2  ;;  %6601 = vmatprep.subr.msk.mxu0 %vm346_vm0, %v7296_v2  ;;  %v9194_v2 = vld [vmem:[#allocation9_spill] sm:$0xff]  ;;  %v8165_v15 = vsel %vm2030_vm5, %v2047_v46, %v2049_v50  ;;  %v9201_v46 = vld [vmem:[#allocation16_spill] sm:$0xff] }
  0xd6   : > { %6347 = vmatmul.mubr.msk.f32.gmra.mrb[34].mxu1 %vm313_vm2, %v2040_v24  ;;  %6555 = vmatmul.mubr.msk.f32.gmra.mrb[18].mxu0 %vm313_vm2, %v8005_v53  ;;  %v2052_v11 = vrot.slane %v9194_v2, 1  ;;  %v8205_v24 = vsel %vm2030_vm5, %v2061_v54, %v2062_v22  ;;  %v2067_v50 = vrot.slane %v9201_v46, 1  ;;  %v2439_v63 = vrot.slane %v9201_v46, 5 }
  0xd7   : > { %6349 = vmatprep.mubr.msk.f32.mxu1 %vm313_vm2, %v8132_v31  ;;  %6557 = vmatprep.mubr.msk.f32.mxu0 %vm313_vm2, %v7318_v5  ;;  %v3972_v46 = vrot.slane %v7500_v19, 6 }
  0xd8   : > { %v8171_v55 = vsel %vm2030_vm5, %v2051_v21, %v2052_v11  ;;  %v8182_v25 = vsel %vm2030_vm5, %v2052_v11, %v2054_v42  ;;  %v8216_v21 = vsel %vm2030_vm5, %v2062_v22, %v2064_v17  ;;  %v2069_v11 = vrot.slane %v7535_v52, 1 }
  0xd9   : > { %v8222_v49 = vsel %vm2030_vm5, %v2066_v20, %v2067_v50  ;;  %v2403_v42 = vrot.slane %v8002_v30, 5  ;;  %v2408_v22 = vrot.slane %v7318_v5, 5  ;;  %v2409_v17 = vrot.slane %v7321_v6, 5 }
  0xda   : > { %6350 = vmatmul.mubr.msk.f32.gmra.mrb[36].mxu1 %vm313_vm2, %v8148_v36  ;;  %6558 = vmatmul.mubr.msk.f32.gmra.mrb[20].mxu0 %vm313_vm2, %v7321_v6  ;;  %v8233_v18 = vsel %vm2030_vm5, %v2067_v50, %v2069_v11  ;;  %v3939_v20 = vrot.slane %v8002_v30, 6  ;;  %v2407_v50 = vsel %vm2402_vm6, %v2404_v44, %v2406_v33  ;;  %v2411_v11 = vrot.slane %v7336_v12, 5 }
  0xdb   : > { %6352 = vmatprep.mubr.msk.f32.mxu1 %vm313_vm2, %v8154_v41  ;;  %6560 = vmatprep.mubr.msk.f32.mxu0 %vm313_vm2, %v9187_v61  ;;  %v2405_v54 = vsel %vm2402_vm6, %v2403_v42, %v2404_v44  ;;  %v3942_v42 = vrot.slane %v8019_v35, 6  ;;  %v2414_v30 = vrot.slane %v9188_v34, 5  ;;  %v2410_v53 = vsel %vm2402_vm6, %v2408_v22, %v2409_v17  ;;  %v7159_v35 = vld [vmem:[%s9101_s1 + $0xc] sm:$0xf]  ;;  %v8284_v22 = vld [vmem:[%s7310_s3 + $0x50] sm:$0xff] }
  0xdc   : > { %v3941_v44 = vsel %vm3933_vm4, %v3939_v20, %v3940_v48  ;;  %v2416_v6 = vrot.slane %v9189_v43, 5  ;;  %v2418_v33 = vrot.slane %v9190_v1, 5  ;;  %v8440_v52 = vsel %vm2402_vm6, %v2439_v63, %v2441_v9  ;;  %v8563_v9 = vld [vmem:[%s7310_s3 + $0x130] sm:$0x3f] }
  0xdd   : > { %v3943_v5 = vsel %vm3933_vm4, %v3940_v48, %v3942_v42  ;;  %v8272_v61 = vsel %vm2402_vm6, %v2413_v4, %v2414_v30  ;;  %v3946_v48 = vsel %vm3933_vm4, %v3944_v37, %v3945_v13  ;;  %v3950_v4 = vrot.slane %v8284_v22, 6  ;;  %9205 = vst [vmem:[#allocation5_spill] sm:$0xff] %v8440_v52 }
  0xde   : > { %6353 = vmatmul.mubr.msk.f32.gmra.mrb[38].mxu1 %vm313_vm2, %v8165_v15  ;;  %6561 = vmatmul.mubr.msk.f32.gmra.mrb[22].mxu0 %vm313_vm2, %v9188_v34  ;;  %v3947_v34 = vrot.slane %v7336_v12, 6  ;;  %v8290_v12 = vld [vmem:[%s9101_s1 + $0x14] sm:$0xf]  ;;  %v8301_v37 = vsel %vm2402_vm6, %v2414_v30, %v2416_v6  ;;  %v2424_v42 = vrot.slane %v9194_v2, 5 }
  0xdf   : > { %6355 = vmatprep.mubr.msk.f32.mxu1 %vm313_vm2, %v8171_v55  ;;  %6563 = vmatprep.mubr.msk.f32.mxu0 %vm313_vm2, %v9190_v1  ;;  %v2421_v1 = vrot.slane %v9192_v28, 5  ;;  %v7167_v6 = vld [vmem:[%s7310_s3 + $0x70] sm:$0x3f] }
  0xe0   : > { %v3948_v20 = vsel %vm3933_vm4, %v3945_v13, %v3947_v34  ;;  %v3957_v34 = vrot.slane %v7167_v6, 6  ;;  %v2434_v6 = vrot.slane %v9199_v62, 5 }
  0xe2   : > { %6356 = vmatmul.mubr.msk.f32.gmra.mrb[40].mxu1 %vm313_vm2, %v8182_v25  ;;  %6564 = vmatmul.mubr.msk.f32.gmra.mrb[24].mxu0 %vm313_vm2, %v9191_v16 }
  0xe3   : > { %6358 = vmatprep.mubr.msk.f32.mxu1 %vm313_vm2, %v8188_v47  ;;  %6566 = vmatprep.mubr.msk.f32.mxu0 %vm313_vm2, %v9193_v58 }
  0xe6   : > { %6359 = vmatmul.mubr.msk.f32.gmra.mrb[42].mxu1 %vm313_vm2, %v8199_v60  ;;  %6567 = vmatmul.mubr.msk.f32.gmra.mrb[26].mxu0 %vm313_vm2, %v9194_v2 }
  0xe7   : > { %6361 = vmatprep.mubr.msk.f32.mxu1 %vm313_vm2, %v8205_v24  ;;  %6569 = vmatprep.mubr.msk.f32.mxu0 %vm313_vm2, %v9196_v10 }
  0xea   : > { %6362 = vmatmul.mubr.msk.f32.gmra.mrb[44].mxu1 %vm313_vm2, %v8216_v21  ;;  %6570 = vmatmul.mubr.msk.f32.gmra.mrb[28].mxu0 %vm313_vm2, %v9197_v3 }
  0xeb   : > { %6364 = vmatprep.mubr.msk.f32.mxu1 %vm313_vm2, %v8222_v49  ;;  %6572 = vmatprep.mubr.msk.f32.mxu0 %vm313_vm2, %v7473_v0 }
  0xee   : > { %6365 = vmatmul.mubr.msk.f32.gmra.mrb[46].mxu1 %vm313_vm2, %v8233_v18  ;;  %6573 = vmatmul.mubr.msk.f32.gmra.mrb[30].mxu0 %vm313_vm2, %v9199_v62 }
  0xef   : > { %6369 = vmatprep.mubr.msk.f32.mxu1 %vm313_vm2, %v2405_v54  ;;  %6577 = vmatprep.mubr.msk.f32.mxu0 %vm313_vm2, %v7859_v39  ;;  %v2412_v39 = vsel %vm2402_vm6, %v2409_v17, %v2411_v11  ;;  %v8280_v54 = vld [vmem:[%s7310_s3 + $0x48] sm:$0xff]  ;;  %v2423_v11 = vrot.slane %v9193_v58, 5 }
  0xf0   : > { %v3949_v43 = vrot.slane %v8280_v54, 6 }
  0xf2   : > { %6370 = vmatmul.mubr.msk.f32.vlgmr.msra.gmra.mrb[32].mxu1 %vm313_vm2, %v2407_v50  ;;  %6578 = vmatmul.mubr.msk.f32.vlgmr.msra.gmra.mrb[16].mxu0 %vm313_vm2, %v7862_v59  ;;  %v2419_v59 = vrot.slane %v9191_v16, 5  ;;  %v7163_v16 = vld [vmem:[%s7310_s3 + $0x58] sm:$0x3f]  ;;  %v8313_v30 = vsel %vm3933_vm4, %v3949_v43, %v3950_v4 }
  0xf3   : > { %6394 = vmatpush3.msk.msra.mxu1 %vm346_vm0, %v7159_v35  ;;  %6602 = vmatpush3.msk.msra.mxu0 %vm346_vm0, %v7159_v35  ;;  %v3952_v17 = vrot.slane %v7163_v16, 6  ;;  %v7166_v35 = vld [vmem:[%s7310_s3 + $0x88] sm:$0x3f]  ;;  %v8347_v43 = vld [vmem:[%s7310_s3 + $0x78] sm:$0xff] }
  0xf4   : > { %6372 = vmatprep.mubr.msk.f32.mxu1 %vm313_vm2, %v2410_v53  ;;  %6580 = vmatprep.mubr.msk.f32.mxu0 %vm313_vm2, %v3941_v44  ;;  %v8308_v50 = vsel %vm2402_vm6, %v2418_v33, %v2419_v59  ;;  %v8316_v53 = vld [vmem:[%s7310_s3 + $0x60] sm:$0xff]  ;;  %v8320_v44 = vld [vmem:[%s7310_s3 + $0x68] sm:$0xff]  ;;  %v8329_v58 = vsel %vm2402_vm6, %v2419_v59, %v2421_v1  ;;  %v2428_v33 = vrot.slane %v9196_v10, 5 }
  0xf5   : > { %6419 = vmatprep.subr.msk.mxu1 %vm346_vm0, %v8290_v12  ;;  %6627 = vmatprep.subr.msk.mxu0 %vm346_vm0, %v8290_v12  ;;  %v3954_v28 = vrot.slane %v8316_v53, 6  ;;  %v3955_v13 = vrot.slane %v8320_v44, 6  ;;  %v8332_v2 = vsel %vm3933_vm4, %v3950_v4, %v3952_v17  ;;  %v3959_v4 = vrot.slane %v8347_v43, 6  ;;  %v8351_v1 = vld [vmem:[%s7310_s3 + $0x80] sm:$0xff] }
  0xf6   : > { %6373 = vmatmul.mubr.msk.f32.gmra.mrb[34].mxu1 %vm313_vm2, %v2412_v39  ;;  %6581 = vmatmul.mubr.msk.f32.gmra.mrb[18].mxu0 %vm313_vm2, %v3943_v5  ;;  %v2426_v39 = vrot.slane %v7166_v35, 5  ;;  %v8338_v5 = vsel %vm2402_vm6, %v2423_v11, %v2424_v42  ;;  %v3960_v16 = vrot.slane %v8351_v1, 6  ;;  %v3962_v17 = vrot.slane %v7166_v35, 6  ;;  %v8382_v35 = vld [vmem:[%s7310_s3 + $0x98] sm:$0xff] }
  0xf7   : > { %6375 = vmatprep.mubr.msk.f32.mxu1 %vm313_vm2, %v8272_v61  ;;  %6583 = vmatprep.mubr.msk.f32.mxu0 %vm313_vm2, %v3946_v48  ;;  %v2429_v48 = vrot.slane %v9197_v3, 5  ;;  %v8344_v59 = vsel %vm3933_vm4, %v3954_v28, %v3955_v13  ;;  %v2431_v3 = vrot.slane %v9198_v26, 5  ;;  %v2433_v28 = vrot.slane %v7473_v0, 5 }
  0xf8   : > { %v8361_v10 = vsel %vm2402_vm6, %v2424_v42, %v2426_v39  ;;  %v8375_v42 = vsel %vm3933_vm4, %v3959_v4, %v3960_v16  ;;  %v8378_v39 = vld [vmem:[%s7310_s3 + $0x90] sm:$0xff]  ;;  %v2436_v4 = vrot.slane %v7500_v19, 5 }
  0xf9   : > { %v8370_v11 = vsel %vm2402_vm6, %v2428_v33, %v2429_v48  ;;  %v3964_v26 = vrot.slane %v8378_v39, 6  ;;  %v8395_v33 = vsel %vm3933_vm4, %v3960_v16, %v3962_v17  ;;  %v8401_v29 = vsel %vm2402_vm6, %v2433_v28, %v2434_v6 }
  0xfa   : > { %6376 = vmatmul.mubr.msk.f32.gmra.mrb[36].mxu1 %vm313_vm2, %v8301_v37  ;;  %6584 = vmatmul.mubr.msk.f32.gmra.mrb[20].mxu0 %vm313_vm2, %v3948_v20  ;;  %v8367_v20 = vsel %vm3933_vm4, %v3955_v13, %v3957_v34  ;;  %v3965_v13 = vrot.slane %v8382_v35, 6  ;;  %v8392_v34 = vsel %vm2402_vm6, %v2429_v48, %v2431_v3  ;;  %9202 = vst [vmem:[#allocation2_spill] sm:$0xff] %v8401_v29  ;;  %v3969_v16 = vrot.slane %v7473_v0, 6 }
  0xfb   : > { %6378 = vmatprep.mubr.msk.f32.mxu1 %vm313_vm2, %v8308_v50  ;;  %6586 = vmatprep.mubr.msk.f32.mxu0 %vm313_vm2, %v8313_v30  ;;  %v3970_v3 = vrot.slane %v9199_v62, 6  ;;  %v8418_v56 = vsel %vm2402_vm6, %v2434_v6, %v2436_v4  ;;  %v8427_v62 = vsel %vm2402_vm6, %v2438_v27, %v2439_v63  ;;  %v7173_v63 = vld [vmem:[%s9101_s1 + $0x18] sm:$0xf]  ;;  %v8495_v27 = vld [vmem:[%s7310_s3 + $0xa8] sm:$0xff]  ;;  %v2644_v6 = vrot.slane %v7676_v7, 1  ;;  %v8545_v4 = vld [vmem:[%s7310_s3 + $0xe0] sm:$0xff] }
  0xfc   : > { %v8407_v48 = vsel %vm3933_vm4, %v3964_v26, %v3965_v13  ;;  %9203 = vst [vmem:[#allocation3_spill] sm:$0xff] %v8418_v56  ;;  %v8424_v0 = vsel %vm3933_vm4, %v3965_v13, %v3967_v32  ;;  %9204 = vst [vmem:[#allocation4_spill] sm:$0xff] %v8427_v62  ;;  %v9207_v32 = vld [vmem:[#allocation17_spill] sm:$0xff] }
  0xfd   : > { %v8431_v17 = vsel %vm3933_vm4, %v3969_v16, %v3970_v3  ;;  %v8445_v19 = vsel %vm3933_vm4, %v3970_v3, %v3972_v46  ;;  %v8535_v26 = vld [vmem:[%s7310_s3 + $0xd8] sm:$0xff]  ;;  %v8555_v16 = vld [vmem:[%s7310_s3 + $0x120] sm:$0xff]  ;;  %v8558_v3 = vld [vmem:[%s7310_s3 + $0x128] sm:$0xff] }
  0xfe   : > { %6379 = vmatmul.mubr.msk.f32.gmra.mrb[38].mxu1 %vm313_vm2, %v8329_v58  ;;  %6587 = vmatmul.mubr.msk.f32.gmra.mrb[22].mxu0 %vm313_vm2, %v8332_v2  ;;  %9206 = vst [vmem:[#allocation6_spill] sm:$0xff] %v8445_v19  ;;  %v3367_v46 = vrot.slane %v8555_v16, 5 }
  0xff   : > { %6381 = vmatprep.mubr.msk.f32.mxu1 %vm313_vm2, %v8338_v5  ;;  %6589 = vmatprep.mubr.msk.f32.mxu0 %vm313_vm2, %v8344_v59 }
 0x102   : > { %6382 = vmatmul.mubr.msk.f32.gmra.mrb[40].mxu1 %vm313_vm2, %v8361_v10  ;;  %6590 = vmatmul.mubr.msk.f32.gmra.mrb[24].mxu0 %vm313_vm2, %v8367_v20 }
 0x103   : > { %6384 = vmatprep.mubr.msk.f32.mxu1 %vm313_vm2, %v8370_v11  ;;  %6592 = vmatprep.mubr.msk.f32.mxu0 %vm313_vm2, %v8375_v42 }
 0x106   : > { %6385 = vmatmul.mubr.msk.f32.gmra.mrb[42].mxu1 %vm313_vm2, %v8392_v34  ;;  %6593 = vmatmul.mubr.msk.f32.gmra.mrb[26].mxu0 %vm313_vm2, %v8395_v33 }
 0x107   : > { %6387 = vmatprep.mubr.msk.f32.mxu1 %vm313_vm2, %v8401_v29  ;;  %6595 = vmatprep.mubr.msk.f32.mxu0 %vm313_vm2, %v8407_v48 }
 0x10a   : > { %6388 = vmatmul.mubr.msk.f32.gmra.mrb[44].mxu1 %vm313_vm2, %v8418_v56  ;;  %6596 = vmatmul.mubr.msk.f32.gmra.mrb[28].mxu0 %vm313_vm2, %v8424_v0 }
 0x10b   : > { %6390 = vmatprep.mubr.msk.f32.mxu1 %vm313_vm2, %v8427_v62  ;;  %6598 = vmatprep.mubr.msk.f32.mxu0 %vm313_vm2, %v8431_v17 }
 0x10e   : > { %6391 = vmatmul.mubr.msk.f32.gmra.mrb[46].mxu1 %vm313_vm2, %v8440_v52  ;;  %6599 = vmatmul.mubr.msk.f32.gmra.mrb[30].mxu0 %vm313_vm2, %v8445_v19 }
 0x10f   : > { %6395 = vmatprep.mubr.msk.f32.mxu1 %vm313_vm2, %v8132_v31  ;;  %6603 = vmatprep.mubr.msk.f32.mxu0 %vm313_vm2, %v8280_v54  ;;  %v2636_v31 = vrot.slane %v9207_v32, 1  ;;  %v9209_v54 = vld [vmem:[#allocation21_spill] sm:$0xff]  ;;  %v3368_v32 = vrot.slane %v8558_v3, 5 }
 0x112   : > { %6396 = vmatmul.mubr.msk.f32.vlgmr.msra.gmra.mrb[32].mxu1 %vm313_vm2, %v8148_v36  ;;  %6604 = vmatmul.mubr.msk.f32.vlgmr.msra.gmra.mrb[16].mxu0 %vm313_vm2, %v8284_v22  ;;  %v9208_v36 = vld [vmem:[#allocation18_spill] sm:$0xff]  ;;  %v2639_v22 = vrot.slane %v9209_v54, 1 }
 0x113   : > { %6420 = vmatpush3.msk.msra.mxu1 %vm346_vm0, %v8290_v12  ;;  %6628 = vmatpush3.msk.msra.mxu0 %vm346_vm0, %v8290_v12  ;;  %v8512_v12 = vld [vmem:[%s7310_s3 + $0xc0] sm:$0xff] }
 0x114   : > { %6398 = vmatprep.mubr.msk.f32.mxu1 %vm313_vm2, %v8154_v41  ;;  %6606 = vmatprep.mubr.msk.f32.mxu0 %vm313_vm2, %v8316_v53  ;;  %v2637_v41 = vrot.slane %v9208_v36, 1  ;;  %v8571_v36 = vsel %vm2402_vm6, %v3367_v46, %v3368_v32 }
 0x115   : > { %6445 = vmatprep.subr.msk.mxu1 %vm346_vm0, %v7173_v63  ;;  %6653 = vmatprep.subr.msk.mxu0 %vm346_vm0, %v7173_v63  ;;  %9210 = vst [vmem:[#allocation7_spill] sm:$0xff] %v8571_v36 }
 0x116   : > { %6399 = vmatmul.mubr.msk.f32.gmra.mrb[34].mxu1 %vm313_vm2, %v8165_v15  ;;  %6607 = vmatmul.mubr.msk.f32.gmra.mrb[18].mxu0 %vm313_vm2, %v8320_v44  ;;  %v8504_v15 = vld [vmem:[%s7310_s3 + $0xb0] sm:$0xff]  ;;  %v8517_v53 = vsel %vm2030_vm5, %v2636_v31, %v2637_v41  ;;  %v2641_v44 = vrot.slane %v7653_v51, 1  ;;  %v8531_v28 = vsel %vm2030_vm5, %v2637_v41, %v2639_v22  ;;  %v3370_v31 = vrot.slane %v8563_v9, 5 }
 0x117   : > { %6401 = vmatprep.mubr.msk.f32.mxu1 %vm313_vm2, %v8171_v55  ;;  %6609 = vmatprep.mubr.msk.f32.mxu0 %vm313_vm2, %v8347_v43  ;;  %v2642_v43 = vrot.slane %v7656_v23, 1  ;;  %v2832_v41 = vrot.slane %v8545_v4, 5 }
 0x119   : > { %v8540_v13 = vsel %vm2030_vm5, %v2641_v44, %v2642_v43  ;;  %v8552_v7 = vsel %vm2030_vm5, %v2642_v43, %v2644_v6  ;;  %v4361_v44 = vrot.slane %v8535_v26, 6  ;;  %v4362_v43 = vrot.slane %v8545_v4, 6 }
 0x11a   : > { %6402 = vmatmul.mubr.msk.f32.gmra.mrb[36].mxu1 %vm313_vm2, %v8182_v25  ;;  %6610 = vmatmul.mubr.msk.f32.gmra.mrb[20].mxu0 %vm313_vm2, %v8351_v1  ;;  %v8524_v1 = vld [vmem:[%s7310_s3 + $0xc8] sm:$0xff] }
 0x11b   : > { %6404 = vmatprep.mubr.msk.f32.mxu1 %vm313_vm2, %v8188_v47  ;;  %6612 = vmatprep.mubr.msk.f32.mxu0 %vm313_vm2, %v8378_v39 }
 0x11e   : > { %6405 = vmatmul.mubr.msk.f32.gmra.mrb[38].mxu1 %vm313_vm2, %v8199_v60  ;;  %6613 = vmatmul.mubr.msk.f32.gmra.mrb[22].mxu0 %vm313_vm2, %v8382_v35 }
 0x11f   : > { %6407 = vmatprep.mubr.msk.f32.mxu1 %vm313_vm2, %v8205_v24  ;;  %6615 = vmatprep.mubr.msk.f32.mxu0 %vm313_vm2, %v8495_v27 }
 0x122   : > { %6408 = vmatmul.mubr.msk.f32.gmra.mrb[40].mxu1 %vm313_vm2, %v8216_v21  ;;  %6616 = vmatmul.mubr.msk.f32.gmra.mrb[24].mxu0 %vm313_vm2, %v8504_v15 }
 0x123   : > { %6410 = vmatprep.mubr.msk.f32.mxu1 %vm313_vm2, %v8222_v49  ;;  %6618 = vmatprep.mubr.msk.f32.mxu0 %vm313_vm2, %v8512_v12 }
 0x126   : > { %6411 = vmatmul.mubr.msk.f32.gmra.mrb[42].mxu1 %vm313_vm2, %v8233_v18  ;;  %6619 = vmatmul.mubr.msk.f32.gmra.mrb[26].mxu0 %vm313_vm2, %v8524_v1 }
 0x127   : > { %6413 = vmatprep.mubr.msk.f32.mxu1 %vm313_vm2, %v8517_v53  ;;  %6621 = vmatprep.mubr.msk.f32.mxu0 %vm313_vm2, %v8535_v26 }
 0x12a   : > { %6414 = vmatmul.mubr.msk.f32.gmra.mrb[44].mxu1 %vm313_vm2, %v8531_v28  ;;  %6622 = vmatmul.mubr.msk.f32.gmra.mrb[28].mxu0 %vm313_vm2, %v8545_v4 }
 0x12b   : > { %6416 = vmatprep.mubr.msk.f32.mxu1 %vm313_vm2, %v8540_v13  ;;  %6624 = vmatprep.mubr.msk.f32.mxu0 %vm313_vm2, %v7653_v51  ;;  %v8578_v51 = vsel %vm2402_vm6, %v3368_v32, %v3370_v31  ;;  %v7182_v32 = vld [vmem:[%s7310_s3 + $0xe8] sm:$0x3f] }
 0x12c   : > { %9211 = vst [vmem:[#allocation8_spill] sm:$0xff] %v8578_v51  ;;  %v2834_v31 = vrot.slane %v7182_v32, 5  ;;  %v7183_v51 = vld [vmem:[%s7310_s3 + $0xf0] sm:$0xff] }
 0x12d   : > { %v2836_v36 = vrot.slane %v7183_v51, 5 }
 0x12e   : > { %6417 = vmatmul.mubr.msk.f32.gmra.mrb[46].mxu1 %vm313_vm2, %v8552_v7  ;;  %6625 = vmatmul.mubr.msk.f32.gmra.mrb[30].mxu0 %vm313_vm2, %v7656_v23 }
 0x12f   : > { %6421 = vmatprep.mubr.msk.f32.mxu1 %vm313_vm2, %v8272_v61  ;;  %6629 = vmatprep.mubr.msk.f32.mxu0 %vm313_vm2, %v8313_v30  ;;  %v8597_v61 = vld [vmem:[%s9101_s1 + $0x1c] sm:$0xf] }
 0x132   : > { %6422 = vmatmul.mubr.msk.f32.vlgmr.msra.gmra.mrb[32].mxu1 %vm313_vm2, %v8301_v37  ;;  %6630 = vmatmul.mubr.msk.f32.vlgmr.msra.gmra.mrb[16].mxu0 %vm313_vm2, %v8332_v2  ;;  %v4356_v2 = vrot.slane %v8512_v12, 6 }
 0x133   : > { %6446 = vmatpush3.msk.msra.mxu1 %vm346_vm0, %v7173_v63  ;;  %6654 = vmatpush3.msk.msra.mxu0 %vm346_vm0, %v7173_v63  ;;  %v2831_v63 = vrot.slane %v8535_v26, 5 }
 0x134   : > { %6424 = vmatprep.mubr.msk.f32.mxu1 %vm313_vm2, %v8308_v50  ;;  %6632 = vmatprep.mubr.msk.f32.mxu0 %vm313_vm2, %v8344_v59  ;;  %v4357_v59 = vrot.slane %v8524_v1, 6 }
 0x135   : > { %v8590_v23 = vpop.f32.mrb[0].mxu1  ;;  %6471 = vmatprep.subr.msk.mxu1 %vm346_vm0, %v8597_v61  ;;  %6679 = vmatprep.subr.msk.mxu0 %vm346_vm0, %v8597_v61 }
 0x136   : > { %v8601_v37 = vpop.f32.mrb[1].mxu1  ;;  %6425 = vmatmul.mubr.msk.f32.gmra.mrb[34].mxu1 %vm313_vm2, %v8329_v58  ;;  %6633 = vmatmul.mubr.msk.f32.gmra.mrb[18].mxu0 %vm313_vm2, %v8367_v20  ;;  %v8645_v22 = vsel %vm3933_vm4, %v4356_v2, %v4357_v59  ;;  %v8664_v2 = vsel %vm2402_vm6, %v2831_v63, %v2832_v41  ;;  %v7185_v63 = vld [vmem:[%s7310_s3 + $0x100] sm:$0x3f] }
 0x137   : > { %6427 = vmatprep.mubr.msk.f32.mxu1 %vm313_vm2, %v8338_v5  ;;  %6635 = vmatprep.mubr.msk.f32.mxu0 %vm313_vm2, %v8375_v42  ;;  %v7181_v42 = vld [vmem:[%s7310_s3 + $0xd0] sm:$0x3f]  ;;  %9212 = vst [vmem:[#allocation9_spill] sm:$0xff] %v8645_v22 }
 0x139   : > { %v8613_v50 = vpop.f32.mrb[2].mxu1 }
 0x13a   : > { %v8615_v30 = vpop.f32.mrb[3].mxu1  ;;  %6428 = vmatmul.mubr.msk.f32.gmra.mrb[36].mxu1 %vm313_vm2, %v8361_v10  ;;  %6636 = vmatmul.mubr.msk.f32.gmra.mrb[20].mxu0 %vm313_vm2, %v8395_v33  ;;  %v4359_v33 = vrot.slane %v7181_v42, 6  ;;  %v4364_v42 = vrot.slane %v7182_v32, 6  ;;  %v2839_v32 = vrot.slane %v7185_v63, 5 }
 0x13b   : > { %6430 = vmatprep.mubr.msk.f32.mxu1 %vm313_vm2, %v8370_v11  ;;  %6638 = vmatprep.mubr.msk.f32.mxu0 %vm313_vm2, %v8407_v48 }
 0x13c   : > { %v8658_v46 = vsel %vm3933_vm4, %v4357_v59, %v4359_v33  ;;  %v8678_v33 = vsel %vm2402_vm6, %v2832_v41, %v2834_v31  ;;  %v8814_v31 = vld [vmem:[%s7310_s3 + $0x138] sm:$0xff] }
 0x13d   : > { %v8625_v58 = vpop.f32.mrb[4].mxu1  ;;  %9213 = vst [vmem:[#allocation10_spill] sm:$0xff] %v8658_v46 }
 0x13e   : > { %v8629_v20 = vpop.f32.mrb[5].mxu1  ;;  %6431 = vmatmul.mubr.msk.f32.gmra.mrb[38].mxu1 %vm313_vm2, %v8392_v34  ;;  %6639 = vmatmul.mubr.msk.f32.gmra.mrb[22].mxu0 %vm313_vm2, %v8424_v0 }
 0x13f   : > { %6433 = vmatprep.mubr.msk.f32.mxu1 %vm313_vm2, %v8401_v29  ;;  %6641 = vmatprep.mubr.msk.f32.mxu0 %vm313_vm2, %v8431_v17  ;;  %v8669_v29 = vsel %vm3933_vm4, %v4361_v44, %v4362_v43  ;;  %v8684_v44 = vsel %vm3933_vm4, %v4362_v43, %v4364_v42 }
 0x141   : > { %v8642_v54 = vpop.f32.mrb[6].mxu1 }
 0x142   : > { %v8649_v6 = vpop.f32.mrb[7].mxu1  ;;  %6434 = vmatmul.mubr.msk.f32.gmra.mrb[40].mxu1 %vm313_vm2, %v8418_v56  ;;  %6642 = vmatmul.mubr.msk.f32.gmra.mrb[24].mxu0 %vm313_vm2, %v8445_v19  ;;  %v7184_v56 = vld [vmem:[%s7310_s3 + $0xf8] sm:$0xff] }
 0x143   : > { %6436 = vmatprep.mubr.msk.f32.mxu1 %vm313_vm2, %v8427_v62  ;;  %6644 = vmatprep.mubr.msk.f32.mxu0 %vm313_vm2, %v8645_v22  ;;  %v2837_v19 = vrot.slane %v7184_v56, 5  ;;  %v4366_v62 = vrot.slane %v7183_v51, 6  ;;  %v4367_v59 = vrot.slane %v7184_v56, 6 }
 0x145   : > { %v8687_v22 = vsel %vm2402_vm6, %v2836_v36, %v2837_v19  ;;  %v8699_v41 = vsel %vm2402_vm6, %v2837_v19, %v2839_v32 }
 0x146   : > { %6437 = vmatmul.mubr.msk.f32.gmra.mrb[42].mxu1 %vm313_vm2, %v8440_v52  ;;  %6645 = vmatmul.mubr.msk.f32.gmra.mrb[26].mxu0 %vm313_vm2, %v8658_v46  ;;  %v4369_v52 = vrot.slane %v7185_v63, 6  ;;  %v8690_v46 = vsel %vm3933_vm4, %v4366_v62, %v4367_v59 }
 0x147   : > { %6439 = vmatprep.mubr.msk.f32.mxu1 %vm313_vm2, %v8664_v2  ;;  %6647 = vmatprep.mubr.msk.f32.mxu0 %vm313_vm2, %v8669_v29 }
 0x148   : > { %v8704_v36 = vsel %vm3933_vm4, %v4367_v59, %v4369_v52 }
 0x14a   : > { %6440 = vmatmul.mubr.msk.f32.gmra.mrb[44].mxu1 %vm313_vm2, %v8678_v33  ;;  %6648 = vmatmul.mubr.msk.f32.gmra.mrb[28].mxu0 %vm313_vm2, %v8684_v44 }
 0x14b   : > { %6442 = vmatprep.mubr.msk.f32.mxu1 %vm313_vm2, %v8687_v22  ;;  %6650 = vmatprep.mubr.msk.f32.mxu0 %vm313_vm2, %v8690_v46 }
 0x14e   : > { %6443 = vmatmul.mubr.msk.f32.gmra.mrb[46].mxu1 %vm313_vm2, %v8699_v41  ;;  %6651 = vmatmul.mubr.msk.f32.gmra.mrb[30].mxu0 %vm313_vm2, %v8704_v36 }
 0x14f   : > { %6447 = vmatprep.mubr.msk.f32.mxu1 %vm313_vm2, %v8171_v55  ;;  %6655 = vmatprep.mubr.msk.f32.mxu0 %vm313_vm2, %v8378_v39  ;;  %v8731_v55 = vld [vmem:[%s9101_s1 + $0x20] sm:$0xf] }
 0x152   : > { %6448 = vmatmul.mubr.msk.f32.vlgmr.msra.gmra.mrb[32].mxu1 %vm313_vm2, %v8182_v25  ;;  %6656 = vmatmul.mubr.msk.f32.vlgmr.msra.gmra.mrb[16].mxu0 %vm313_vm2, %v8382_v35  ;;  %v8775_v35 = vld [vmem:[%s7310_s3 + $0x110] sm:$0xff] }
 0x153   : > { %6472 = vmatpush3.msk.msra.mxu1 %vm346_vm0, %v8597_v61  ;;  %6680 = vmatpush3.msk.msra.mxu0 %vm346_vm0, %v8597_v61  ;;  %v3014_v52 = vrot.slane %v8775_v35, 1 }
 0x154   : > { %6450 = vmatprep.mubr.msk.f32.mxu1 %vm313_vm2, %v8188_v47  ;;  %6658 = vmatprep.mubr.msk.f32.mxu0 %vm313_vm2, %v8495_v27 }
 0x155   : > { %v8724_v62 = vpop.f32.mrb[8].mxu1  ;;  %6497 = vmatprep.subr.msk.mxu1 %vm346_vm0, %v8731_v55  ;;  %6705 = vmatprep.subr.msk.mxu0 %vm346_vm0, %v8731_v55 }
 0x156   : > { %v8735_v25 = vpop.f32.mrb[9].mxu1  ;;  %6451 = vmatmul.mubr.msk.f32.gmra.mrb[34].mxu1 %vm313_vm2, %v8199_v60  ;;  %6659 = vmatmul.mubr.msk.f32.gmra.mrb[18].mxu0 %vm313_vm2, %v8504_v15 }
 0x157   : > { %6453 = vmatprep.mubr.msk.f32.mxu1 %vm313_vm2, %v8205_v24  ;;  %6661 = vmatprep.mubr.msk.f32.mxu0 %vm313_vm2, %v8512_v12  ;;  %v3018_v12 = vrot.slane %v8555_v16, 1 }
 0x159   : > { %v8747_v47 = vpop.f32.mrb[10].mxu1 }
 0x15a   : > { %v8749_v39 = vpop.f32.mrb[11].mxu1  ;;  %6454 = vmatmul.mubr.msk.f32.gmra.mrb[36].mxu1 %vm313_vm2, %v8216_v21  ;;  %6662 = vmatmul.mubr.msk.f32.gmra.mrb[20].mxu0 %vm313_vm2, %v8524_v1  ;;  %v8771_v21 = vld [vmem:[%s7310_s3 + $0x108] sm:$0xff] }
 0x15b   : > { %6456 = vmatprep.mubr.msk.f32.mxu1 %vm313_vm2, %v8222_v49  ;;  %6664 = vmatprep.mubr.msk.f32.mxu0 %vm313_vm2, %v8535_v26  ;;  %v3013_v49 = vrot.slane %v8771_v21, 1 }
 0x15d   : > { %v8759_v60 = vpop.f32.mrb[12].mxu1  ;;  %v3015_v15 = vsel %vm2030_vm5, %v3013_v49, %v3014_v52 }
 0x15e   : > { %v8761_v24 = vpop.f32.mrb[13].mxu1  ;;  %6457 = vmatmul.mubr.msk.f32.gmra.mrb[38].mxu1 %vm313_vm2, %v8233_v18  ;;  %6665 = vmatmul.mubr.msk.f32.gmra.mrb[22].mxu0 %vm313_vm2, %v8545_v4  ;;  %v3016_v18 = vrot.slane %v7813_v40, 1  ;;  %v3021_v40 = vrot.slane %v8563_v9, 1 }
 0x15f   : > { %6459 = vmatprep.mubr.msk.f32.mxu1 %vm313_vm2, %v8517_v53  ;;  %6667 = vmatprep.mubr.msk.f32.mxu0 %vm313_vm2, %v7183_v51  ;;  %v3019_v53 = vrot.slane %v8558_v3, 1 }
 0x160   : > { %v3017_v51 = vsel %vm2030_vm5, %v3014_v52, %v3016_v18 }
 0x161   : > { %v8778_v19 = vpop.f32.mrb[14].mxu1  ;;  %v3022_v32 = vsel %vm2030_vm5, %v3019_v53, %v3021_v40 }
 0x162   : > { %v8780_v27 = vpop.f32.mrb[15].mxu1  ;;  %6460 = vmatmul.mubr.msk.f32.gmra.mrb[40].mxu1 %vm313_vm2, %v8531_v28  ;;  %6668 = vmatmul.mubr.msk.f32.gmra.mrb[24].mxu0 %vm313_vm2, %v7184_v56 }
 0x163   : > { %6462 = vmatprep.mubr.msk.f32.mxu1 %vm313_vm2, %v8540_v13  ;;  %6670 = vmatprep.mubr.msk.f32.mxu0 %vm313_vm2, %v8771_v21 }
 0x165   : > { %v8793_v1 = vpop.f32.mrb[16].mxu1  ;;  %v6293_v28 = vpop.f32.mrb[0].mxu0 }
 0x166   : > { %v6733_v56 = vadd.f32 %v8793_v1, %v8590_v23  ;;  %v8797_v26 = vpop.f32.mrb[17].mxu1  ;;  %6463 = vmatmul.mubr.msk.f32.gmra.mrb[42].mxu1 %vm313_vm2, %v8552_v7  ;;  %v1874_v13 = vpop.f32.mrb[1].mxu0  ;;  %6671 = vmatmul.mubr.msk.f32.gmra.mrb[26].mxu0 %vm313_vm2, %v8775_v35  ;;  %v3020_v23 = vsel %vm2030_vm5, %v3018_v12, %v3019_v53 }
 0x167   : > { %v6735_v4 = vadd.f32 %v8797_v26, %v8601_v37  ;;  %6465 = vmatprep.mubr.msk.f32.mxu1 %vm313_vm2, %v3015_v15  ;;  %6673 = vmatprep.mubr.msk.f32.mxu0 %vm313_vm2, %v8555_v16 }
 0x168   : > { %v6734_v61 = vadd.f32 %v6733_v56, %v6293_v28 }
 0x169   : > { %v6736_v7 = vadd.f32 %v6735_v4, %v1874_v13  ;;  %v8811_v43 = vpop.f32.mrb[18].mxu1  ;;  %v6296_v42 = vpop.f32.mrb[2].mxu0 }
 0x16a   : > { %v1991_v37 = vmul.f32 %v6734_v61, %v6734_v61  ;;  %v6737_v59 = vadd.f32 %v8811_v43, %v8613_v50  ;;  %v8818_v63 = vpop.f32.mrb[19].mxu1  ;;  %6466 = vmatmul.mubr.msk.f32.gmra.mrb[44].mxu1 %vm313_vm2, %v3017_v51  ;;  %v1884_v18 = vpop.f32.mrb[3].mxu0  ;;  %6674 = vmatmul.mubr.msk.f32.gmra.mrb[28].mxu0 %vm313_vm2, %v8558_v3  ;;  %v8830_v50 = vld [vmem:[%s7310_s3 + $0x140] sm:$0xff] }
 0x16b   : > { %v1969_v49 = vadd.f32 %v6736_v7, %v6734_v61  ;;  %v1990_v52 = vmul.f32 %v6736_v7, %v6736_v7  ;;  %v6739_v15 = vadd.f32 %v8818_v63, %v8615_v30  ;;  %6468 = vmatprep.mubr.msk.f32.mxu1 %vm313_vm2, %v3020_v23  ;;  %6676 = vmatprep.mubr.msk.f32.mxu0 %vm313_vm2, %v8814_v31 }
 0x16c   : > { %v6738_v12 = vadd.f32 %v6737_v59, %v6296_v42 }
 0x16d   : > { %v2006_v28 = vadd.f32 %v1991_v37, %v1990_v52  ;;  %v6740_v56 = vadd.f32 %v6739_v15, %v1884_v18  ;;  %v8832_v53 = vpop.f32.mrb[20].mxu1  ;;  %v6299_v40 = vpop.f32.mrb[4].mxu0 }
 0x16e   : > { %v6741_v13 = vadd.f32 %v8832_v53, %v8625_v58  ;;  %v8836_v30 = vpop.f32.mrb[21].mxu1  ;;  %6469 = vmatmul.mubr.msk.f32.gmra.mrb[46].mxu1 %vm313_vm2, %v3022_v32  ;;  %v1894_v61 = vpop.f32.mrb[5].mxu0  ;;  %6677 = vmatmul.mubr.msk.f32.gmra.mrb[30].mxu0 %vm313_vm2, %v8830_v50  ;;  %v1993_v58 = vmul.f32 %v6738_v12, %v6738_v12 }
 0x16f   : > { %v1970_v4 = vadd.f32 %v6740_v56, %v1969_v49  ;;  %v1992_v51 = vmul.f32 %v6740_v56, %v6740_v56  ;;  %v6743_v23 = vadd.f32 %v8836_v30, %v8629_v20  ;;  %6473 = vmatprep.mubr.msk.f32.mxu1 %vm313_vm2, %v7462_v57  ;;  %6681 = vmatprep.mubr.msk.f32.mxu0 %vm313_vm2, %v7495_v14 }
 0x170   : > { %v6742_v7 = vadd.f32 %v6741_v13, %v6299_v40 }
 0x171   : > { %v2007_v37 = vadd.f32 %v2006_v28, %v1992_v51  ;;  %v6744_v42 = vadd.f32 %v6743_v23, %v1894_v61  ;;  %v1971_v59 = vadd.f32 %v6738_v12, %v1970_v4  ;;  %v8847_v32 = vpop.f32.mrb[22].mxu1  ;;  %v6302_v49 = vpop.f32.mrb[6].mxu0 }
 0x172   : > { %v6745_v20 = vadd.f32 %v8847_v32, %v8642_v54  ;;  %v8851_v52 = vpop.f32.mrb[23].mxu1  ;;  %6474 = vmatmul.mubr.msk.f32.vlgmr.msra.gmra.mrb[32].mxu1 %vm313_vm2, %v7485_v8  ;;  %v1904_v56 = vpop.f32.mrb[7].mxu0  ;;  %v1995_v12 = vmul.f32 %v6742_v7, %v6742_v7  ;;  %6682 = vmatmul.mubr.msk.f32.vlgmr.msra.gmra.mrb[16].mxu0 %vm313_vm2, %v7520_v38 }
 0x173   : > { %v1972_v57 = vadd.f32 %v6744_v42, %v1971_v59  ;;  %v1994_v18 = vmul.f32 %v6744_v42, %v6744_v42  ;;  %v2008_v15 = vadd.f32 %v2007_v37, %v1993_v58  ;;  %v6747_v28 = vadd.f32 %v8851_v52, %v8649_v6  ;;  %6498 = vmatpush3.msk.msra.mxu1 %vm346_vm0, %v8731_v55  ;;  %v9214_v42 = vld [vmem:[#allocation19_spill] sm:$0xff] }
 0x174   : > { %v6746_v40 = vadd.f32 %v6745_v20, %v6302_v49  ;;  %6476 = vmatprep.mubr.msk.f32.mxu1 %vm313_vm2, %v7495_v14  ;;  %6706 = vmatpush3.msk.msra.mxu0 %vm346_vm0, %v8731_v55 }
 0x175   : > { %v2009_v54 = vadd.f32 %v2008_v15, %v1994_v18  ;;  %v6748_v8 = vadd.f32 %v6747_v28, %v1904_v56  ;;  %v1973_v13 = vadd.f32 %v6742_v7, %v1972_v57  ;;  %v8865_v4 = vpop.f32.mrb[24].mxu1  ;;  %6684 = vmatprep.mubr.msk.f32.mxu0 %vm313_vm2, %v7529_v45  ;;  %v6305_v6 = vpop.f32.mrb[8].mxu0 }
 0x176   : > { %v6749_v51 = vadd.f32 %v8865_v4, %v8724_v62  ;;  %v8871_v61 = vpop.f32.mrb[25].mxu1  ;;  %6477 = vmatmul.mubr.msk.f32.gmra.mrb[34].mxu1 %vm313_vm2, %v7520_v38  ;;  %v1914_v58 = vpop.f32.mrb[9].mxu0  ;;  %6685 = vmatmul.mubr.msk.f32.gmra.mrb[18].mxu0 %vm313_vm2, %v9214_v42  ;;  %v1997_v62 = vmul.f32 %v6746_v40, %v6746_v40  ;;  %v9215_v38 = vld [vmem:[#allocation20_spill] sm:$0xff] }
 0x177   : > { %v1974_v14 = vadd.f32 %v6748_v8, %v1973_v13  ;;  %v1996_v23 = vmul.f32 %v6748_v8, %v6748_v8  ;;  %v2010_v7 = vadd.f32 %v2009_v54, %v1995_v12  ;;  %v6751_v55 = vadd.f32 %v8871_v61, %v8735_v25  ;;  %6479 = vmatprep.mubr.msk.f32.mxu1 %vm313_vm2, %v7529_v45  ;;  %v9216_v8 = vld [vmem:[#allocation22_spill] sm:$0xff] }
 0x178   : > { %v6750_v37 = vadd.f32 %v6749_v51, %v6305_v6  ;;  %6687 = vmatprep.mubr.msk.f32.mxu0 %vm313_vm2, %v9215_v38 }
 0x179   : > { %v2011_v59 = vadd.f32 %v2010_v7, %v1996_v23  ;;  %v6752_v49 = vadd.f32 %v6751_v55, %v1914_v58  ;;  %v1975_v20 = vadd.f32 %v6746_v40, %v1974_v14  ;;  %v8881_v57 = vpop.f32.mrb[26].mxu1  ;;  %v6308_v18 = vpop.f32.mrb[10].mxu0  ;;  %v9217_v23 = vld [vmem:[#allocation23_spill] sm:$0xff] }
 0x17a   : > { %v6753_v25 = vadd.f32 %v8881_v57, %v8747_v47  ;;  %v8887_v15 = vpop.f32.mrb[27].mxu1  ;;  %6480 = vmatmul.mubr.msk.f32.gmra.mrb[36].mxu1 %vm313_vm2, %v9214_v42  ;;  %v1924_v12 = vpop.f32.mrb[11].mxu0  ;;  %6688 = vmatmul.mubr.msk.f32.gmra.mrb[20].mxu0 %vm313_vm2, %v9216_v8  ;;  %v1999_v47 = vmul.f32 %v6750_v37, %v6750_v37 }
 0x17b   : > { %v1976_v45 = vadd.f32 %v6752_v49, %v1975_v20  ;;  %v1998_v56 = vmul.f32 %v6752_v49, %v6752_v49  ;;  %v2012_v28 = vadd.f32 %v2011_v59, %v1997_v62  ;;  %v6755_v40 = vadd.f32 %v8887_v15, %v8749_v39  ;;  %6482 = vmatprep.mubr.msk.f32.mxu1 %vm313_vm2, %v9215_v38  ;;  %v9218_v20 = vld [vmem:[#allocation24_spill] sm:$0xff] }
 0x17c   : > { %v6754_v54 = vadd.f32 %v6753_v25, %v6308_v18  ;;  %6690 = vmatprep.mubr.msk.f32.mxu0 %vm313_vm2, %v9217_v23 }
 0x17d   : > { %v2013_v13 = vadd.f32 %v2012_v28, %v1998_v56  ;;  %v6756_v6 = vadd.f32 %v6755_v40, %v1924_v12  ;;  %v1977_v51 = vadd.f32 %v6750_v37, %v1976_v45  ;;  %v8897_v14 = vpop.f32.mrb[28].mxu1  ;;  %v6311_v7 = vpop.f32.mrb[12].mxu0  ;;  %v9219_v56 = vld [vmem:[#allocation25_spill] sm:$0xff]  ;;  %v3192_v40 = vrot.slane %v8555_v16, 3 }
 0x17e   : > { %v6757_v39 = vadd.f32 %v8897_v14, %v8759_v60  ;;  %v8903_v58 = vpop.f32.mrb[29].mxu1  ;;  %6483 = vmatmul.mubr.msk.f32.gmra.mrb[38].mxu1 %vm313_vm2, %v9216_v8  ;;  %v1934_v59 = vpop.f32.mrb[13].mxu0  ;;  %6691 = vmatmul.mubr.msk.f32.gmra.mrb[22].mxu0 %vm313_vm2, %v9218_v20  ;;  %v2001_v60 = vmul.f32 %v6754_v54, %v6754_v54  ;;  %v3193_v8 = vrot.slane %v8558_v3, 3 }
 0x17f   : > { %v1978_v55 = vadd.f32 %v6756_v6, %v1977_v51  ;;  %v2000_v42 = vmul.f32 %v6756_v6, %v6756_v6  ;;  %v2014_v62 = vadd.f32 %v2013_v13, %v1999_v47  ;;  %v6759_v37 = vadd.f32 %v8903_v58, %v8761_v24  ;;  %6485 = vmatprep.mubr.msk.f32.mxu1 %vm313_vm2, %v9217_v23  ;;  %v9220_v23 = vld [vmem:[#allocation26_spill] sm:$0xff] }
 0x180   : > { %v6758_v49 = vadd.f32 %v6757_v39, %v6311_v7  ;;  %6693 = vmatprep.mubr.msk.f32.mxu0 %vm313_vm2, %v9219_v56  ;;  %v3195_v7 = vrot.slane %v8563_v9, 3 }
 0x181   : > { %v2015_v38 = vadd.f32 %v2014_v62, %v2000_v42  ;;  %v6760_v18 = vadd.f32 %v6759_v37, %v1934_v59  ;;  %v1979_v25 = vadd.f32 %v6754_v54, %v1978_v55  ;;  %v8913_v45 = vpop.f32.mrb[30].mxu1  ;;  %v6314_v28 = vpop.f32.mrb[14].mxu0  ;;  %v9221_v59 = vld [vmem:[#allocation27_spill] sm:$0xff]  ;;  %v4720_v37 = vrot.slane %v8814_v31, 3 }
 0x182   : > { %v6761_v24 = vadd.f32 %v8913_v45, %v8778_v19  ;;  %v8919_v12 = vpop.f32.mrb[31].mxu1  ;;  %6486 = vmatmul.mubr.msk.f32.gmra.mrb[40].mxu1 %vm313_vm2, %v9218_v20  ;;  %v1944_v6 = vpop.f32.mrb[15].mxu0  ;;  %6694 = vmatmul.mubr.msk.f32.gmra.mrb[24].mxu0 %vm313_vm2, %v9220_v23  ;;  %v2003_v39 = vmul.f32 %v6758_v49, %v6758_v49  ;;  %v3194_v20 = vsel %vm270_vm1, %v3192_v40, %v3193_v8 }
 0x183   : > { %v1980_v47 = vadd.f32 %v6760_v18, %v1979_v25  ;;  %v2002_v54 = vmul.f32 %v6760_v18, %v6760_v18  ;;  %v2016_v13 = vadd.f32 %v2015_v38, %v2001_v60  ;;  %v6763_v51 = vadd.f32 %v8919_v12, %v8780_v27  ;;  %6488 = vmatprep.mubr.msk.f32.mxu1 %vm313_vm2, %v9219_v56  ;;  %v8940_v60 = vld [vmem:[%s7310_s3 + $0x148] sm:$0x3f] }
 0x184   : > { %v6762_v19 = vadd.f32 %v6761_v24, %v6314_v28  ;;  %6696 = vmatprep.mubr.msk.f32.mxu0 %vm313_vm2, %v9221_v59  ;;  %v4721_v27 = vrot.slane %v8830_v50, 3  ;;  %v3196_v56 = vsel %vm270_vm1, %v3193_v8, %v3195_v7  ;;  %v4723_v40 = vrot.slane %v8940_v60, 3 }
 0x185   : > { %v2017_v55 = vadd.f32 %v2016_v13, %v2002_v54  ;;  %v6764_v42 = vadd.f32 %v6763_v51, %v1944_v6  ;;  %v1981_v62 = vadd.f32 %v6758_v49, %v1980_v47  ;;  %v9222_v49 = vld [vmem:[#allocation28_spill] sm:$0xff]  ;;  %v4890_v6 = vrot.slane %v8771_v21, 6 }
 0x186   : > { %6489 = vmatmul.mubr.msk.f32.gmra.mrb[42].mxu1 %vm313_vm2, %v9220_v23  ;;  %6697 = vmatmul.mubr.msk.f32.gmra.mrb[26].mxu0 %vm313_vm2, %v9222_v49  ;;  %v2005_v28 = vmul.f32 %v6762_v19, %v6762_v19  ;;  %v4722_v54 = vsel %vm270_vm1, %v4720_v37, %v4721_v27  ;;  %v4724_v8 = vsel %vm270_vm1, %v4721_v27, %v4723_v40  ;;  %v4891_v51 = vrot.slane %v8775_v35, 6 }
 0x187   : > { %v1982_v38 = vadd.f32 %v6764_v42, %v1981_v62  ;;  %v2004_v18 = vmul.f32 %v6764_v42, %v6764_v42  ;;  %v2018_v25 = vadd.f32 %v2017_v55, %v2003_v39  ;;  %6491 = vmatprep.mubr.msk.f32.mxu1 %vm313_vm2, %v9221_v59  ;;  %6699 = vmatprep.mubr.msk.f32.mxu0 %vm313_vm2, %v3194_v20  ;;  %v3363_v23 = vrot.slane %v8775_v35, 5  ;;  %v9231_v42 = vld [vmem:[#allocation8_spill] sm:$0xff] }
 0x188   : > { %v4892_v39 = vsel %vm3933_vm4, %v4890_v6, %v4891_v51  ;;  %v4895_v55 = vrot.slane %v8555_v16, 6  ;;  %v4900_v35 = vrot.slane %v8814_v31, 6  ;;  %v4901_v16 = vrot.slane %v8830_v50, 6  ;;  %v9230_v50 = vld [vmem:[#allocation7_spill] sm:$0xff] }
 0x189   : > { %v8947_v24 = vadd.f32 %v6762_v19, %v1982_v38  ;;  %v2019_v47 = vadd.f32 %v2018_v25, %v2004_v18  ;;  %v3362_v19 = vrot.slane %v8771_v21, 5 }
 0x18a   : > { %6492 = vmatmul.mubr.msk.f32.gmra.mrb[44].mxu1 %vm313_vm2, %v9222_v49  ;;  %6700 = vmatmul.mubr.msk.f32.gmra.mrb[28].mxu0 %vm313_vm2, %v3196_v56  ;;  %v4902_v31 = vsel %vm3933_vm4, %v4900_v35, %v4901_v16 }
 0x18b   : > { %v8954_v13 = vadd.f32 %v2019_v47, %v2005_v28  ;;  %6494 = vmatprep.mubr.msk.f32.mxu1 %vm313_vm2, %v3194_v20  ;;  %6702 = vmatprep.mubr.msk.f32.mxu0 %vm313_vm2, %v4722_v54  ;;  %v1984_v47 = vrot.slane %v8947_v24, 4 }
 0x18e   : > { %6495 = vmatmul.mubr.msk.f32.gmra.mrb[46].mxu1 %vm313_vm2, %v3196_v56  ;;  %6703 = vmatmul.mubr.msk.f32.gmra.mrb[30].mxu0 %vm313_vm2, %v4724_v8 }
 0x18f   : > { %6499 = vmatprep.mubr.msk.f32.mxu1 %vm313_vm2, %v8338_v5  ;;  %6707 = vmatprep.mubr.msk.f32.mxu0 %vm313_vm2, %v8407_v48  ;;  %v9223_v5 = vld [vmem:[#allocation2_spill] sm:$0xff] }
 0x190   : > { %v9224_v48 = vld [vmem:[#allocation6_spill] sm:$0xff] }
 0x192   : > { %6500 = vmatmul.mubr.msk.f32.vlgmr.msra.gmra.mrb[32].mxu1 %vm313_vm2, %v8361_v10  ;;  %6708 = vmatmul.mubr.msk.f32.vlgmr.msra.gmra.mrb[16].mxu0 %vm313_vm2, %v8424_v0  ;;  %v9225_v10 = vld [vmem:[#allocation9_spill] sm:$0xff]  ;;  %v9227_v0 = vld [vmem:[#allocation4_spill] sm:$0xff] }
 0x193   : > { %6502 = vmatprep.mubr.msk.f32.mxu1 %vm313_vm2, %v8370_v11  ;;  %6710 = vmatprep.mubr.msk.f32.mxu0 %vm313_vm2, %v8431_v17  ;;  %v9226_v11 = vld [vmem:[#allocation3_spill] sm:$0xff]  ;;  %v9228_v17 = vld [vmem:[#allocation10_spill] sm:$0xff] }
 0x196   : > { %6503 = vmatmul.mubr.msk.f32.gmra.mrb[34].mxu1 %vm313_vm2, %v8392_v34  ;;  %6711 = vmatmul.mubr.msk.f32.gmra.mrb[18].mxu0 %vm313_vm2, %v9224_v48  ;;  %v9229_v34 = vld [vmem:[#allocation5_spill] sm:$0xff] }
 0x197   : > { %6505 = vmatprep.mubr.msk.f32.mxu1 %vm313_vm2, %v9223_v5  ;;  %6713 = vmatprep.mubr.msk.f32.mxu0 %vm313_vm2, %v9225_v10 }
 0x19a   : > { %6506 = vmatmul.mubr.msk.f32.gmra.mrb[36].mxu1 %vm313_vm2, %v9226_v11  ;;  %6714 = vmatmul.mubr.msk.f32.gmra.mrb[20].mxu0 %vm313_vm2, %v9228_v17 }
 0x19b   : > { %6508 = vmatprep.mubr.msk.f32.mxu1 %vm313_vm2, %v9227_v0  ;;  %6716 = vmatprep.mubr.msk.f32.mxu0 %vm313_vm2, %v8669_v29  ;;  %v7189_v29 = vld [vmem:[%s7310_s3 + $0x118] sm:$0x3f] }
 0x19c   : > { %v4893_v7 = vrot.slane %v7189_v29, 6 }
 0x19e   : > { %6509 = vmatmul.mubr.msk.f32.gmra.mrb[38].mxu1 %vm313_vm2, %v9229_v34  ;;  %6717 = vmatmul.mubr.msk.f32.gmra.mrb[22].mxu0 %vm313_vm2, %v8684_v44  ;;  %v3365_v44 = vrot.slane %v7189_v29, 5  ;;  %v4894_v21 = vsel %vm3933_vm4, %v4891_v51, %v4893_v7 }
 0x19f   : > { %6511 = vmatprep.mubr.msk.f32.mxu1 %vm313_vm2, %v8664_v2  ;;  %6719 = vmatprep.mubr.msk.f32.mxu0 %vm313_vm2, %v8690_v46  ;;  %v4896_v2 = vrot.slane %v8558_v3, 6  ;;  %v3364_v46 = vsel %vm2402_vm6, %v3362_v19, %v3363_v23 }
 0x1a1   : > { %v4897_v3 = vsel %vm3933_vm4, %v4895_v55, %v4896_v2 }
 0x1a2   : > { %6512 = vmatmul.mubr.msk.f32.gmra.mrb[40].mxu1 %vm313_vm2, %v8678_v33  ;;  %6720 = vmatmul.mubr.msk.f32.gmra.mrb[24].mxu0 %vm313_vm2, %v8704_v36  ;;  %v4898_v33 = vrot.slane %v8563_v9, 6  ;;  %v4903_v9 = vrot.slane %v8940_v60, 6 }
 0x1a3   : > { %6514 = vmatprep.mubr.msk.f32.mxu1 %vm313_vm2, %v8687_v22  ;;  %6722 = vmatprep.mubr.msk.f32.mxu0 %vm313_vm2, %v4892_v39  ;;  %v3366_v22 = vsel %vm2402_vm6, %v3363_v23, %v3365_v44  ;;  %v9047_v23 = vadd.f32 %v1984_v47, %v8947_v24 }
 0x1a4   : > { %v4899_v36 = vsel %vm3933_vm4, %v4896_v2, %v4898_v33 }
 0x1a6   : > { %6515 = vmatmul.mubr.msk.f32.gmra.mrb[42].mxu1 %vm313_vm2, %v8699_v41  ;;  %6723 = vmatmul.mubr.msk.f32.gmra.mrb[26].mxu0 %vm313_vm2, %v4894_v21  ;;  %v4904_v41 = vsel %vm3933_vm4, %v4901_v16, %v4903_v9  ;;  %v2021_v21 = vrot.slane %v8954_v13, 4 }
 0x1a7   : > { %6517 = vmatprep.mubr.msk.f32.mxu1 %vm313_vm2, %v3364_v46  ;;  %6725 = vmatprep.mubr.msk.f32.mxu0 %vm313_vm2, %v4897_v3 }
 0x1aa   : > { %6518 = vmatmul.mubr.msk.f32.gmra.mrb[44].mxu1 %vm313_vm2, %v3366_v22  ;;  %6726 = vmatmul.mubr.msk.f32.gmra.mrb[28].mxu0 %vm313_vm2, %v4899_v36 }
 0x1ab   : > { %6520 = vmatprep.mubr.msk.f32.mxu1 %vm313_vm2, %v9230_v50  ;;  %6728 = vmatprep.mubr.msk.f32.mxu0 %vm313_vm2, %v4902_v31 }
 0x1ae   : > { %6521 = vmatmul.mubr.msk.f32.gmra.mrb[46].mxu1 %vm313_vm2, %v9231_v42  ;;  %6729 = vmatmul.mubr.msk.f32.gmra.mrb[30].mxu0 %vm313_vm2, %v4904_v41 }
 0x265   : > { %v6501_v62 = vpop.f32.mrb[32].mxu1  ;;  %v6709_v27 = vpop.f32.mrb[16].mxu0 }
 0x266   : > { %v6765_v59 = vadd.f32 %v6501_v62, %v8793_v1  ;;  %v3446_v37 = vpop.f32.mrb[33].mxu1  ;;  %v6781_v38 = vadd.f32 %v6709_v27, %v8793_v1  ;;  %v4983_v18 = vpop.f32.mrb[17].mxu0 }
 0x267   : > { %v6766_v20 = vadd.f32 %v3446_v37, %v8797_v26  ;;  %v6782_v56 = vadd.f32 %v4983_v18, %v8797_v26 }
 0x268   : > { %v3563_v60 = vmul.f32 %v6765_v59, %v6765_v59  ;;  %v5100_v40 = vmul.f32 %v6781_v38, %v6781_v38 }
 0x269   : > { %v3541_v25 = vadd.f32 %v6766_v20, %v6765_v59  ;;  %v3562_v49 = vmul.f32 %v6766_v20, %v6766_v20  ;;  %v6504_v28 = vpop.f32.mrb[34].mxu1  ;;  %v5078_v48 = vadd.f32 %v6782_v56, %v6781_v38  ;;  %v5099_v10 = vmul.f32 %v6782_v56, %v6782_v56  ;;  %v6712_v11 = vpop.f32.mrb[18].mxu0 }
 0x26a   : > { %v6767_v54 = vadd.f32 %v6504_v28, %v8811_v43  ;;  %v3456_v8 = vpop.f32.mrb[35].mxu1  ;;  %v6783_v1 = vadd.f32 %v6712_v11, %v8811_v43  ;;  %v4993_v17 = vpop.f32.mrb[19].mxu0 }
 0x26b   : > { %v3578_v5 = vadd.f32 %v3563_v60, %v3562_v49  ;;  %v6768_v0 = vadd.f32 %v3456_v8, %v8818_v63  ;;  %v5115_v34 = vadd.f32 %v5100_v40, %v5099_v10  ;;  %v6784_v26 = vadd.f32 %v4993_v17, %v8818_v63 }
 0x26c   : > { %v3565_v29 = vmul.f32 %v6767_v54, %v6767_v54  ;;  %v5102_v33 = vmul.f32 %v6783_v1, %v6783_v1 }
 0x26d   : > { %v3542_v6 = vadd.f32 %v6768_v0, %v3541_v25  ;;  %v3564_v51 = vmul.f32 %v6768_v0, %v6768_v0  ;;  %v6507_v19 = vpop.f32.mrb[36].mxu1  ;;  %v5079_v2 = vadd.f32 %v6784_v26, %v5078_v48  ;;  %v5101_v44 = vmul.f32 %v6784_v26, %v6784_v26  ;;  %v6715_v46 = vpop.f32.mrb[20].mxu0 }
 0x26e   : > { %v6769_v7 = vadd.f32 %v6507_v19, %v8832_v53  ;;  %v3466_v39 = vpop.f32.mrb[37].mxu1  ;;  %v6785_v35 = vadd.f32 %v6715_v46, %v8832_v53  ;;  %v5003_v16 = vpop.f32.mrb[21].mxu0 }
 0x26f   : > { %v3579_v55 = vadd.f32 %v3578_v5, %v3564_v51  ;;  %v6770_v43 = vadd.f32 %v3466_v39, %v8836_v30  ;;  %v3543_v63 = vadd.f32 %v6767_v54, %v3542_v6  ;;  %v5116_v3 = vadd.f32 %v5115_v34, %v5101_v44 }
 0x270   : > { %v6786_v36 = vadd.f32 %v5003_v16, %v8836_v30  ;;  %v3567_v31 = vmul.f32 %v6769_v7, %v6769_v7  ;;  %v5080_v41 = vadd.f32 %v6783_v1, %v5079_v2  ;;  %v5104_v60 = vmul.f32 %v6785_v35, %v6785_v35 }
 0x271   : > { %v3566_v24 = vmul.f32 %v6770_v43, %v6770_v43  ;;  %v3580_v22 = vadd.f32 %v3579_v55, %v3565_v29  ;;  %v6510_v9 = vpop.f32.mrb[38].mxu1  ;;  %v3544_v50 = vadd.f32 %v6770_v43, %v3543_v63  ;;  %v5117_v27 = vadd.f32 %v5116_v3, %v5102_v33  ;;  %v6718_v20 = vpop.f32.mrb[22].mxu0 }
 0x272   : > { %v6771_v42 = vadd.f32 %v6510_v9, %v8847_v32  ;;  %v3476_v62 = vpop.f32.mrb[39].mxu1  ;;  %v5103_v37 = vmul.f32 %v6786_v36, %v6786_v36  ;;  %v5081_v38 = vadd.f32 %v6786_v36, %v5080_v41  ;;  %v6787_v18 = vadd.f32 %v6718_v20, %v8847_v32  ;;  %v5013_v49 = vpop.f32.mrb[23].mxu0 }
 0x273   : > { %v3581_v59 = vadd.f32 %v3580_v22, %v3566_v24  ;;  %v6772_v53 = vadd.f32 %v3476_v62, %v8851_v52  ;;  %v3545_v25 = vadd.f32 %v6769_v7, %v3544_v50  ;;  %v6788_v47 = vadd.f32 %v5013_v49, %v8851_v52 }
 0x274   : > { %v5118_v30 = vadd.f32 %v5117_v27, %v5103_v37  ;;  %v3569_v54 = vmul.f32 %v6771_v42, %v6771_v42  ;;  %v5082_v5 = vadd.f32 %v6785_v35, %v5081_v38  ;;  %v5106_v34 = vmul.f32 %v6787_v18, %v6787_v18 }
 0x275   : > { %v3568_v56 = vmul.f32 %v6772_v53, %v6772_v53  ;;  %v3582_v28 = vadd.f32 %v3581_v59, %v3567_v31  ;;  %v6513_v40 = vpop.f32.mrb[40].mxu1  ;;  %v3546_v8 = vadd.f32 %v6772_v53, %v3545_v25  ;;  %v5105_v0 = vmul.f32 %v6788_v47, %v6788_v47  ;;  %v6721_v17 = vpop.f32.mrb[24].mxu0 }
 0x276   : > { %v6773_v48 = vadd.f32 %v6513_v40, %v8865_v4  ;;  %v3486_v10 = vpop.f32.mrb[41].mxu1  ;;  %v5119_v1 = vadd.f32 %v5118_v30, %v5104_v60  ;;  %v5083_v6 = vadd.f32 %v6788_v47, %v5082_v5  ;;  %v6789_v51 = vadd.f32 %v6721_v17, %v8865_v4  ;;  %v5023_v19 = vpop.f32.mrb[25].mxu0 }
 0x277   : > { %v3583_v11 = vadd.f32 %v3582_v28, %v3568_v56  ;;  %v6774_v32 = vadd.f32 %v3486_v10, %v8871_v61  ;;  %v3547_v26 = vadd.f32 %v6771_v42, %v3546_v8  ;;  %v6790_v39 = vadd.f32 %v5023_v19, %v8871_v61 }
 0x278   : > { %v5120_v52 = vadd.f32 %v5119_v1, %v5105_v0  ;;  %v3571_v2 = vmul.f32 %v6773_v48, %v6773_v48  ;;  %v5084_v46 = vadd.f32 %v6787_v18, %v5083_v6  ;;  %v5108_v24 = vmul.f32 %v6789_v51, %v6789_v51 }
 0x279   : > { %v3570_v29 = vmul.f32 %v6774_v32, %v6774_v32  ;;  %v3584_v7 = vadd.f32 %v3583_v11, %v3569_v54  ;;  %v6516_v55 = vpop.f32.mrb[42].mxu1  ;;  %v3548_v44 = vadd.f32 %v6774_v32, %v3547_v26  ;;  %v5107_v63 = vmul.f32 %v6790_v39, %v6790_v39  ;;  %v6724_v3 = vpop.f32.mrb[26].mxu0 }
 0x27a   : > { %v6775_v43 = vadd.f32 %v6516_v55, %v8881_v57  ;;  %v3496_v33 = vpop.f32.mrb[43].mxu1  ;;  %v5121_v16 = vadd.f32 %v5120_v52, %v5106_v34  ;;  %v5085_v22 = vadd.f32 %v6790_v39, %v5084_v46  ;;  %v6791_v36 = vadd.f32 %v6724_v3, %v8881_v57  ;;  %v5033_v31 = vpop.f32.mrb[27].mxu0 }
 0x27b   : > { %v3585_v35 = vadd.f32 %v3584_v7, %v3570_v29  ;;  %v6776_v4 = vadd.f32 %v3496_v33, %v8887_v15  ;;  %v3549_v9 = vadd.f32 %v6773_v48, %v3548_v44  ;;  %v6792_v42 = vadd.f32 %v5033_v31, %v8887_v15 }
 0x27c   : > { %v5122_v61 = vadd.f32 %v5121_v16, %v5107_v63  ;;  %v3573_v59 = vmul.f32 %v6775_v43, %v6775_v43  ;;  %v5086_v27 = vadd.f32 %v6789_v51, %v5085_v22  ;;  %v5110_v49 = vmul.f32 %v6791_v36, %v6791_v36 }
 0x27d   : > { %v3572_v50 = vmul.f32 %v6776_v4, %v6776_v4  ;;  %v3586_v41 = vadd.f32 %v3585_v35, %v3571_v2  ;;  %v6519_v62 = vpop.f32.mrb[44].mxu1  ;;  %v3550_v37 = vadd.f32 %v6776_v4, %v3549_v9  ;;  %v5109_v38 = vmul.f32 %v6792_v42, %v6792_v42  ;;  %v6727_v25 = vpop.f32.mrb[28].mxu0 }
 0x27e   : > { %v6777_v20 = vadd.f32 %v6519_v62, %v8897_v14  ;;  %v3506_v53 = vpop.f32.mrb[45].mxu1  ;;  %v5123_v18 = vadd.f32 %v5122_v61, %v5108_v24  ;;  %v5087_v30 = vadd.f32 %v6792_v42, %v5086_v27  ;;  %v6793_v56 = vadd.f32 %v6727_v25, %v8897_v14  ;;  %v5043_v47 = vpop.f32.mrb[29].mxu0 }
 0x27f   : > { %v3587_v60 = vadd.f32 %v3586_v41, %v3572_v50  ;;  %v6778_v57 = vadd.f32 %v3506_v53, %v8903_v58  ;;  %v3551_v28 = vadd.f32 %v6775_v43, %v3550_v37  ;;  %v6794_v8 = vadd.f32 %v5043_v47, %v8903_v58 }
 0x280   : > { %v5124_v15 = vadd.f32 %v5123_v18, %v5109_v38  ;;  %v3575_v48 = vmul.f32 %v6777_v20, %v6777_v20  ;;  %v5088_v11 = vadd.f32 %v6791_v36, %v5087_v30  ;;  %v5112_v51 = vmul.f32 %v6793_v56, %v6793_v56 }
 0x281   : > { %v3574_v40 = vmul.f32 %v6778_v57, %v6778_v57  ;;  %v3588_v54 = vadd.f32 %v3587_v60, %v3573_v59  ;;  %v6522_v5 = vpop.f32.mrb[46].mxu1  ;;  %v3552_v10 = vadd.f32 %v6778_v57, %v3551_v28  ;;  %v5111_v32 = vmul.f32 %v6794_v8, %v6794_v8  ;;  %v6730_v6 = vpop.f32.mrb[30].mxu0 }
 0x282   : > { %v6779_v0 = vadd.f32 %v6522_v5, %v8913_v45  ;;  %v3516_v1 = vpop.f32.mrb[47].mxu1  ;;  %v5125_v34 = vadd.f32 %v5124_v15, %v5110_v49  ;;  %v5089_v26 = vadd.f32 %v6794_v8, %v5088_v11  ;;  %v6795_v19 = vadd.f32 %v6730_v6, %v8913_v45  ;;  %v5053_v29 = vpop.f32.mrb[31].mxu0 }
 0x283   : > { %v3589_v17 = vadd.f32 %v3588_v54, %v3574_v40  ;;  %v6780_v14 = vadd.f32 %v3516_v1, %v8919_v12  ;;  %v3553_v52 = vadd.f32 %v6777_v20, %v3552_v10  ;;  %v6796_v55 = vadd.f32 %v5053_v29, %v8919_v12 }
 0x284   : > { %v5126_v58 = vadd.f32 %v5125_v34, %v5111_v32  ;;  %v2022_v2 = vadd.f32 %v2021_v21, %v8954_v13  ;;  %v5090_v46 = vadd.f32 %v6793_v56, %v5089_v26  ;;  %v3577_v43 = vmul.f32 %v6779_v0, %v6779_v0 }
 0x285   : > { %v3576_v7 = vmul.f32 %v6780_v14, %v6780_v14  ;;  %v3590_v39 = vadd.f32 %v3589_v17, %v3575_v48  ;;  %v3554_v44 = vadd.f32 %v6780_v14, %v3553_v52  ;;  %v5113_v35 = vmul.f32 %v6796_v55, %v6796_v55 }
 0x286   : > { %v5127_v63 = vadd.f32 %v5126_v58, %v5112_v51  ;;  %v1986_v16 = vrot.slane %v9047_v23, 2  ;;  %v5091_v3 = vadd.f32 %v6796_v55, %v5090_v46  ;;  %v5114_v4 = vmul.f32 %v6795_v19, %v6795_v19 }
 0x287   : > { %v3591_v33 = vadd.f32 %v3590_v39, %v3576_v7  ;;  %v3555_v45 = vadd.f32 %v6779_v0, %v3554_v44  ;;  %v2023_v12 = vrot.slane %v2022_v2, 2  ;;  %v5136_v0 = vld [vmem:[%s7281_s20] sm:$0x3f] }
 0x288   : > { %v5128_v22 = vadd.f32 %v5127_v63, %v5113_v35  ;;  %v5092_v9 = vadd.f32 %v6795_v19, %v5091_v3  ;;  %v1987_v13 = vadd.f32 %v1986_v16, %v9047_v23 }
 0x289   : > { %v3592_v24 = vadd.f32 %v3591_v33, %v3577_v43  ;;  %v3556_v36 = vrot.slane %v3555_v45, 4  ;;  %v2024_v37 = vadd.f32 %v2023_v12, %v2022_v2 }
 0x28a   : > { %v5129_v61 = vadd.f32 %v5128_v22, %v5114_v4  ;;  %v5093_v50 = vrot.slane %v5092_v9, 4  ;;  %v1988_v53 = vrot.slane %v1987_v13, 1 }
 0x28b   : > { %v3593_v31 = vrot.slane %v3592_v24, 4  ;;  %v3557_v21 = vadd.f32 %v3556_v36, %v3555_v45  ;;  %v2025_v30 = vrot.slane %v2024_v37, 1 }
 0x28c   : > { %v5130_v42 = vrot.slane %v5129_v61, 4  ;;  %v5094_v59 = vadd.f32 %v5093_v50, %v5092_v9  ;;  %v1989_v28 = vadd.f32 %v1988_v53, %v1987_v13 }
 0x28d   : > { %v3594_v41 = vadd.f32 %v3593_v31, %v3592_v24  ;;  %v3558_v62 = vrot.slane %v3557_v21, 2  ;;  %v2026_v48 = vadd.f32 %v2025_v30, %v2024_v37 }
 0x28e   : > { %v5131_v20 = vadd.f32 %v5130_v42, %v5129_v61  ;;  %v5095_v38 = vrot.slane %v5094_v59, 2 }
 0x28f   : > { %v3595_v27 = vrot.slane %v3594_v41, 2  ;;  %v3559_v60 = vadd.f32 %v3558_v62, %v3557_v21 }
 0x290   : > { %v5132_v25 = vrot.slane %v5131_v20, 2  ;;  %v5096_v49 = vadd.f32 %v5095_v38, %v5094_v59 }
 0x291   : > { %v3596_v18 = vadd.f32 %v3595_v27, %v3594_v41  ;;  %v3560_v57 = vrot.slane %v3559_v60, 1 }
 0x292   : > { %v5133_v23 = vadd.f32 %v5132_v25, %v5131_v20  ;;  %v5097_v15 = vrot.slane %v5096_v49, 1 }
 0x293   : > { %v3597_v56 = vrot.slane %v3596_v18, 1  ;;  %v3561_v47 = vadd.f32 %v3560_v57, %v3559_v60 }
 0x294   : > { %v5134_v40 = vrot.slane %v5133_v23, 1  ;;  %v5098_v5 = vadd.f32 %v5097_v15, %v5096_v49 }
 0x295   : > { %v3598_v54 = vadd.f32 %v3597_v56, %v3596_v18  ;;  %v5138_v8 = vsel %vm5137_vm7, %v1989_v28, %v3561_v47 }
 0x296   : > { %v5139_v10 = vsel %vm3933_vm4, %v5138_v8, %v5098_v5  ;;  %v5135_v11 = vadd.f32 %v5134_v40, %v5133_v23 }
 0x297   : > { %v5140_v1 = vsel %vm2402_vm6, %v5139_v10, %v2026_v48 }
 0x298   : > { %v5141_v17 = vsel %vm346_vm0, %v5140_v1, %v3598_v54 }
 0x299   : > { %v5142_v32 = vsel %vm270_vm1, %v5141_v17, %v5135_v11 }
 0x29a   : > { %v5143_v34 = vadd.f32 %v5142_v32, %v5136_v0 }
 0x29c   : > { %5144 = vst [vmem:[%s7281_s20] sm:$0x3f] %v5143_v34 }
 0x29d PF: > { %s12_s13 = sadd.s32 1, %s7228_s13   ;;  %s9232_s9 = smov %s7220_s11 }
 0x29e   : > { %p9_p7 = scmp.ge.s32.totalorder %s12_s13, 6   ;;  %s9233_s10 = smov %s7224_s12 }
 0x29f   : > { %s9234_s11 = smov %s9237_s14  ;;  %s9235_s12 = smov %s9241_s15 }
 0x2a0   :  { %11 = sbr.rel (!%p9_p7) target bundleno = 3 (0x3), region = 71 }

</bundles_post_ra>
